<compile_context>
chip_gen: v5e
topology: v5e:2x2
jax: 0.10.0
libtpu: 0.0.40
codegen_flags: <defaults>
</compile_context>

<pallas_src>
import functools

import jax
import jax.numpy as jnp
from jax import lax
from jax.experimental import pallas as pl
from jax.experimental.pallas import tpu as pltpu


def _channel_attention_kernel(x_ref, w1t_ref, w2t_ref, o_ref, sum_acc, max_acc,
                              *, hw_true, s_tile, acc_strips, n_chunks, inv_hw,
                              has_pad):
    """Grid = (batch blocks, HW tiles). x_ref block: (nb, C, s_tile, 128)."""
    hw_step = pl.program_id(1)
    n_hw = pl.num_programs(1)

    # ---- init running (sum, max) accumulators at the first HW tile.
    @pl.when(hw_step == 0)
    def _init():
        sum_acc[...] = jnp.zeros_like(sum_acc)
        max_acc[...] = jnp.full_like(max_acc, -jnp.inf)

    if has_pad:
        # Flat element index (strip*128 + lane) within one (acc_strips, 128) chunk.
        strip_iota = lax.broadcasted_iota(jnp.int32, (1, 1, acc_strips, 128), 2)
        lane_iota = lax.broadcasted_iota(jnp.int32, (1, 1, acc_strips, 128), 3)
        flat_iota = strip_iota * 128 + lane_iota
        tile_elem_base = hw_step * (s_tile * 128)

    nb_blk, c_blk = sum_acc.shape[0], sum_acc.shape[1]
    zeros = jnp.zeros((nb_blk, c_blk, acc_strips, 128), jnp.float32)
    neg_inf = jnp.full((nb_blk, c_blk, acc_strips, 128), -jnp.inf, jnp.float32)

    # ---- per-tile reduction: chunked, f32, pure VPU (no whole-tile f32 copy).
    def chunk_body(i, carry):
        s_part, m_part = carry
        off = pl.multiple_of(i * acc_strips, acc_strips)
        xc = x_ref[:, :, pl.ds(off, acc_strips), :].astype(jnp.float32)
        if has_pad:
            gidx = tile_elem_base + off * 128 + flat_iota
            xm = jnp.where(gidx < hw_true, xc, -jnp.inf)
        else:
            xm = xc
        return s_part + xc, jnp.maximum(m_part, xm)

    s_part, m_part = lax.fori_loop(0, n_chunks, chunk_body, (zeros, neg_inf),
                                   unroll=min(n_chunks, 8))

    sum_acc[...] = sum_acc[...] + s_part
    max_acc[...] = jnp.maximum(max_acc[...], m_part)

    # ---- finalize on the last HW tile: pool -> fused shared MLP -> sigmoid.
    @pl.when(hw_step == n_hw - 1)
    def _finalize():
        s = jnp.sum(jnp.sum(sum_acc[...], axis=2), axis=-1)     # (nb, C)
        m = jnp.max(jnp.max(max_acc[...], axis=2), axis=-1)     # (nb, C)
        avg = s * inv_hw
        nb = o_ref.shape[0]
        pooled = jnp.concatenate([avg, m], axis=0)               # (2*nb, C)
        w1t = w1t_ref[...].astype(jnp.float32)                   # (C, hidden)
        w2t = w2t_ref[...].astype(jnp.float32)                   # (hidden, C)
        h = jnp.maximum(
            jnp.dot(pooled, w1t, preferred_element_type=jnp.float32), 0.0)
        y = jnp.dot(h, w2t, preferred_element_type=jnp.float32)  # (2*nb, C)
        out = jax.nn.sigmoid(y[:nb] + y[nb:])
        o_ref[...] = out.astype(o_ref.dtype)


def _default_block_budget_bytes():
    """Per-generation budget for one (nb, C, s_tile, 128) input block."""
    try:
        kind = jax.devices()[0].device_kind.lower()
    except Exception:
        return 8 << 20
    if "v5 lite" in kind or "v5lite" in kind or "v5e" in kind:
        return 8 << 20          # v5e: modest tiles, raise scoped VMEM explicitly
    if "v6" in kind or "trillium" in kind:
        return 16 << 20         # v6e: 128 MiB VMEM + fast HBM -> big tiles
    if "v7" in kind:
        return 12 << 20         # v7x: only 64 MiB physical VMEM
    return 8 << 20


def _plan_hw_tiling(hw, nb, c, itemsize, budget_bytes, hw_tile=None):
    """Pick (s_tile, n_hw, acc_strips, n_chunks); strips are 128 lanes each."""
    s_full = pl.cdiv(hw, 128)
    if hw_tile is not None:
        s_tile = max(1, pl.cdiv(int(hw_tile), 128))
        if s_tile >= s_full:
            s_tile, n_hw = s_full, 1
        else:
            # multi-tile blocks: second-to-last block dim must be a multiple of 8
            s_tile = max(8, ((s_tile + 7) // 8) * 8)
            n_hw = pl.cdiv(s_full, s_tile)
    else:
        strip_bytes = nb * c * 128 * itemsize
        max_strips = max(1, budget_bytes // strip_bytes)
        if s_full <= max_strips:
            s_tile, n_hw = s_full, 1
        else:
            max_strips = max(8, (max_strips // 8) * 8)
            n_hw = pl.cdiv(s_full, max_strips)
            s_tile = ((pl.cdiv(s_full, n_hw) + 7) // 8) * 8
    for acc_strips in (8, 4, 2, 1):
        if s_tile % acc_strips == 0:
            break
    n_chunks = s_tile // acc_strips
    return s_tile, n_hw, acc_strips, n_chunks


def channel_attention_forward(x, w1, w2, *, nb=None, hw_tile=None,
                              block_budget_bytes=None):
    """x: (N, C, H, W); w1: (C//ratio, C); w2: (C, C//ratio) -> (N, C, 1, 1)."""
    N, C, H, W = x.shape
    hidden = w1.shape[0]
    assert w1.shape == (hidden, C) and w2.shape == (C, hidden)
    hw = H * W
    itemsize = jnp.dtype(x.dtype).itemsize

    if nb is None:
        # Keep the batch block small so the 'parallel' grid axis has >= 2 blocks
        # (v7x megacore) and the VMEM budget goes into a longer HW tile instead.
        nb = 8 if (N >= 16 and N % 8 == 0) else N
    assert N % nb == 0 and (nb == N or nb % 8 == 0), \
        "nb must divide N and be either N or a multiple of 8"

    if block_budget_bytes is None:
        block_budget_bytes = _default_block_budget_bytes()

    s_tile, n_hw, acc_strips, n_chunks = _plan_hw_tiling(
        hw, nb, C, itemsize, block_budget_bytes, hw_tile)
    s_padded = s_tile * n_hw
    hw_padded = s_padded * 128
    has_pad = hw_padded != hw

    # Lane-aligned layout (N, C, strips, 128). Zero padding is exact for the sum
    # (inv_hw uses the true H*W); the max path masks padded lanes to -inf in-kernel.
    x_flat = x.reshape(N, C, hw)
    if has_pad:
        x_flat = jnp.pad(x_flat, ((0, 0), (0, 0), (0, hw_padded - hw)))
    x4 = x_flat.reshape(N, C, s_padded, 128)

    # Pre-transpose weights so the kernel runs lane-dense matmuls.
    w1_t = jnp.transpose(w1)   # (C, hidden)
    w2_t = jnp.transpose(w2)   # (hidden, C)

    kernel = functools.partial(
        _channel_attention_kernel,
        hw_true=hw, s_tile=s_tile, acc_strips=acc_strips, n_chunks=n_chunks,
        inv_hw=1.0 / hw, has_pad=has_pad)

    # Explicit VMEM budget: double-buffered input block + accumulators + weights /
    # output buffers + headroom; capped at 48 MiB (safe on v7x's 64 MiB VMEM),
    # floored at 32 MiB (raises v5e's 16 MiB default scoped limit).
    block_bytes = nb * C * s_tile * 128 * itemsize
    acc_bytes = 2 * nb * C * acc_strips * 128 * 4
    w_bytes = 2 * C * hidden * jnp.dtype(w1.dtype).itemsize
    out_bytes = nb * C * itemsize
    vmem_limit = 2 * block_bytes + acc_bytes + 2 * (w_bytes + out_bytes) + (6 << 20)
    vmem_limit = int(min(max(vmem_limit, 32 << 20), 48 << 20))

    cost = pl.CostEstimate(
        flops=2 * N * C * hw_padded + 8 * N * C * hidden,
        transcendentals=N * C,
        bytes_accessed=x4.size * itemsize
        + (w1.size + w2.size) * jnp.dtype(w1.dtype).itemsize
        + N * C * itemsize,
    )

    out = pl.pallas_call(
        kernel,
        out_shape=jax.ShapeDtypeStruct((N, C), x.dtype),
        grid_spec=pltpu.PrefetchScalarGridSpec(
            num_scalar_prefetch=0,
            grid=(N // nb, n_hw),
            in_specs=[
                pl.BlockSpec((nb, C, s_tile, 128), lambda n, h: (n, 0, h, 0)),
                pl.BlockSpec((C, hidden), lambda n, h: (0, 0)),
                pl.BlockSpec((hidden, C), lambda n, h: (0, 0)),
            ],
            out_specs=pl.BlockSpec((nb, C), lambda n, h: (n, 0)),
            scratch_shapes=[
                pltpu.VMEM((nb, C, acc_strips, 128), jnp.float32),  # running sum
                pltpu.VMEM((nb, C, acc_strips, 128), jnp.float32),  # running max
            ],
        ),
        compiler_params=pltpu.CompilerParams(
            dimension_semantics=("parallel", "arbitrary"),
            vmem_limit_bytes=vmem_limit),
        cost_estimate=cost,
    )(x4, w1_t, w2_t)

    return out.reshape(N, C, 1, 1)


def channel_attention_reference(x, w1, w2):
    """Pure-JAX reference reproducing the PyTorch forward."""
    avg = jnp.mean(x, axis=(2, 3), keepdims=True)          # (N, C, 1, 1)
    mx = jnp.max(x, axis=(2, 3), keepdims=True)            # (N, C, 1, 1)

    def mlp(v):                                             # v: (N, C, 1, 1)
        h = jnp.einsum('hc,nc->nh', w1, v[:, :, 0, 0])      # fc1 (1x1 conv, no bias)
        h = jax.nn.relu(h)
        o = jnp.einsum('ch,nh->nc', w2, h)                  # fc2
        return o[:, :, None, None]

    return jax.nn.sigmoid(mlp(avg) + mlp(mx))


if __name__ == "__main__":
    key = jax.random.PRNGKey(0)
    kx, k1, k2, kx2, kx3 = jax.random.split(key, 5)

    # Small shapes consistent with the module (in_planes divisible by ratio).
    N, C, H, W = 2, 32, 16, 16
    ratio = 4
    hidden = C // ratio

    x = jax.random.normal(kx, (N, C, H, W), dtype=jnp.float32)
    # Conv2d(C, hidden, 1, bias=False) weight (hidden, C, 1, 1) -> (hidden, C)
    w1 = jax.random.normal(k1, (hidden, C), dtype=jnp.float32) * (1.0 / C) ** 0.5
    # Conv2d(hidden, C, 1, bias=False) weight (C, hidden, 1, 1) -> (C, hidden)
    w2 = jax.random.normal(k2, (C, hidden), dtype=jnp.float32) * (1.0 / hidden) ** 0.5

    # 1) Auto-planned single-tile path.
    ref = channel_attention_reference(x, w1, w2)
    out = jax.block_until_ready(channel_attention_forward(x, w1, w2))
    assert out.shape == (N, C, 1, 1)
    assert jnp.allclose(out, ref, atol=1e-5, rtol=1e-5)

    # 2) Multi-HW-tile path (hw=4096 split into 2 grid steps x 2 in-kernel chunks).
    x2 = jax.random.normal(kx2, (N, C, 64, 64), dtype=jnp.float32)
    ref2 = channel_attention_reference(x2, w1, w2)
    out2 = jax.block_until_ready(channel_attention_forward(x2, w1, w2, hw_tile=2048))
    assert jnp.allclose(out2, ref2, atol=1e-5, rtol=1e-5)

    # 3) Non-128-multiple spatial size (13x13 -> padded); all-negative input so a
    #    missing -inf mask on the padded lanes would corrupt the max pooling.
    x3 = -(jnp.abs(jax.random.normal(kx3, (N, C, 13, 13), dtype=jnp.float32)) + 0.1)
    ref3 = channel_attention_reference(x3, w1, w2)
    out3 = jax.block_until_ready(channel_attention_forward(x3, w1, w2))
    assert jnp.allclose(out3, ref3, atol=1e-5, rtol=1e-5)

    print("KERNEL_OK")
</pallas_src>

<mosaic_0001>
module attributes {stable_mosaic.version = 11 : i64} {
  func.func @_channel_attention_kernel(%arg0: i32, %arg1: i32, %arg2: memref<2x32x2x128xf32, #tpu.memory_space<vmem>>, %arg3: memref<32x8xf32, #tpu.memory_space<vmem>>, %arg4: memref<8x32xf32, #tpu.memory_space<vmem>>, %arg5: memref<2x32xf32, #tpu.memory_space<vmem>>, %arg6: memref<2x32x2x128xf32, #tpu.memory_space<vmem>>, %arg7: memref<2x32x2x128xf32, #tpu.memory_space<vmem>>) attributes {dimension_semantics = [#tpu.dimension_semantics<parallel>, #tpu.dimension_semantics<arbitrary>], iteration_bounds = array<i64: 1, 1>, scalar_prefetch = 0 : i64, scratch_operands = 2 : i64, tpu.core_type = #tpu.core_type<tc>, window_params = [{transform_indices = @transform_0, window_bounds = array<i64: 2, 32, 2, 128>}, {pipeline_mode = #tpu.pipeline_mode<synchronous>, transform_indices = @transform_1, window_bounds = array<i64: 32, 8>}, {pipeline_mode = #tpu.pipeline_mode<synchronous>, transform_indices = @transform_2, window_bounds = array<i64: 8, 32>}, {transform_indices = @transform_3, window_bounds = array<i64: 2, 32>}]} {
    %c0_i32 = arith.constant 0 : i32
    %0 = arith.cmpi eq, %arg1, %c0_i32 : i32
    %1 = arith.extui %0 : i1 to i32
    %c0_i32_0 = arith.constant 0 : i32
    %2 = arith.cmpi ne, %1, %c0_i32_0 : i32
    scf.if %2 {
      %cst_23 = arith.constant 0.000000e+00 : f32
      %20 = vector.broadcast %cst_23 : f32 to vector<2x32x2x128xf32>
      %c0_24 = arith.constant 0 : index
      %c0_25 = arith.constant 0 : index
      %c0_26 = arith.constant 0 : index
      %c0_27 = arith.constant 0 : index
      %21 = vector.load %arg6[%c0_24, %c0_25, %c0_26, %c0_27] : memref<2x32x2x128xf32, #tpu.memory_space<vmem>>, vector<2x32x2x128xf32>
      tpu.vector_store %arg6[%c0_24, %c0_25, %c0_26, %c0_27], %20 {strides = array<i32>} : memref<2x32x2x128xf32, #tpu.memory_space<vmem>>, vector<2x32x2x128xf32>,
      %cst_28 = arith.constant 0xFF800000 : f32
      %22 = vector.broadcast %cst_28 : f32 to vector<2x32x2x128xf32>
      %c0_29 = arith.constant 0 : index
      %c0_30 = arith.constant 0 : index
      %c0_31 = arith.constant 0 : index
      %c0_32 = arith.constant 0 : index
      %23 = vector.load %arg7[%c0_29, %c0_30, %c0_31, %c0_32] : memref<2x32x2x128xf32, #tpu.memory_space<vmem>>, vector<2x32x2x128xf32>
      tpu.vector_store %arg7[%c0_29, %c0_30, %c0_31, %c0_32], %22 {strides = array<i32>} : memref<2x32x2x128xf32, #tpu.memory_space<vmem>>, vector<2x32x2x128xf32>,
    } else {
    }
    %cst = arith.constant 0.000000e+00 : f32
    %3 = vector.broadcast %cst : f32 to vector<2x32x2x128xf32>
    %cst_1 = arith.constant 0xFF800000 : f32
    %4 = vector.broadcast %cst_1 : f32 to vector<2x32x2x128xf32>
    %c0_i32_2 = arith.constant 0 : i32
    %c2_i32 = arith.constant 2 : i32
    %5 = arith.muli %c0_i32_2, %c2_i32 : i32
    %6 = tpu.assume_multiple %5, 2 : i32
    %c0 = arith.constant 0 : index
    %c0_3 = arith.constant 0 : index
    %7 = arith.index_cast %6 : i32 to index
    %c0_4 = arith.constant 0 : index
    %8 = vector.load %arg2[%c0, %c0_3, %7, %c0_4] : memref<2x32x2x128xf32, #tpu.memory_space<vmem>>, vector<2x32x2x128xf32>
    %9 = arith.addf %3, %8 : vector<2x32x2x128xf32>
    %10 = arith.maximumf %4, %8 : vector<2x32x2x128xf32>
    %c1_i32 = arith.constant 1 : i32
    %c0_5 = arith.constant 0 : index
    %c0_6 = arith.constant 0 : index
    %c0_7 = arith.constant 0 : index
    %c0_8 = arith.constant 0 : index
    %11 = vector.load %arg6[%c0_5, %c0_6, %c0_7, %c0_8] : memref<2x32x2x128xf32, #tpu.memory_space<vmem>>, vector<2x32x2x128xf32>
    %12 = arith.addf %11, %9 : vector<2x32x2x128xf32>
    %c0_9 = arith.constant 0 : index
    %c0_10 = arith.constant 0 : index
    %c0_11 = arith.constant 0 : index
    %c0_12 = arith.constant 0 : index
    %13 = vector.load %arg6[%c0_9, %c0_10, %c0_11, %c0_12] : memref<2x32x2x128xf32, #tpu.memory_space<vmem>>, vector<2x32x2x128xf32>
    tpu.vector_store %arg6[%c0_9, %c0_10, %c0_11, %c0_12], %12 {strides = array<i32>} : memref<2x32x2x128xf32, #tpu.memory_space<vmem>>, vector<2x32x2x128xf32>,
    %c0_13 = arith.constant 0 : index
    %c0_14 = arith.constant 0 : index
    %c0_15 = arith.constant 0 : index
    %c0_16 = arith.constant 0 : index
    %14 = vector.load %arg7[%c0_13, %c0_14, %c0_15, %c0_16] : memref<2x32x2x128xf32, #tpu.memory_space<vmem>>, vector<2x32x2x128xf32>
    %15 = arith.maximumf %14, %10 : vector<2x32x2x128xf32>
    %c0_17 = arith.constant 0 : index
    %c0_18 = arith.constant 0 : index
    %c0_19 = arith.constant 0 : index
    %c0_20 = arith.constant 0 : index
    %16 = vector.load %arg7[%c0_17, %c0_18, %c0_19, %c0_20] : memref<2x32x2x128xf32, #tpu.memory_space<vmem>>, vector<2x32x2x128xf32>
    tpu.vector_store %arg7[%c0_17, %c0_18, %c0_19, %c0_20], %15 {strides = array<i32>} : memref<2x32x2x128xf32, #tpu.memory_space<vmem>>, vector<2x32x2x128xf32>,
    %c0_i32_21 = arith.constant 0 : i32
    %17 = arith.cmpi eq, %arg1, %c0_i32_21 : i32
    %18 = arith.extui %17 : i1 to i32
    %c0_i32_22 = arith.constant 0 : i32
    %19 = arith.cmpi ne, %18, %c0_i32_22 : i32
    scf.if %19 {
      %c0_23 = arith.constant 0 : index
      %c0_24 = arith.constant 0 : index
      %c0_25 = arith.constant 0 : index
      %c0_26 = arith.constant 0 : index
      %20 = vector.load %arg6[%c0_23, %c0_24, %c0_25, %c0_26] : memref<2x32x2x128xf32, #tpu.memory_space<vmem>>, vector<2x32x2x128xf32>
      %cst_27 = arith.constant dense<0.000000e+00> : vector<2x32x128xf32>
      %21 = vector.multi_reduction <add>, %20, %cst_27 [2] : vector<2x32x2x128xf32> to vector<2x32x128xf32>
      %cst_28 = arith.constant dense<0.000000e+00> : vector<2x32xf32>
      %22 = vector.multi_reduction <add>, %21, %cst_28 [2] : vector<2x32x128xf32> to vector<2x32xf32>
      %c0_29 = arith.constant 0 : index
      %c0_30 = arith.constant 0 : index
      %c0_31 = arith.constant 0 : index
      %c0_32 = arith.constant 0 : index
      %23 = vector.load %arg7[%c0_29, %c0_30, %c0_31, %c0_32] : memref<2x32x2x128xf32, #tpu.memory_space<vmem>>, vector<2x32x2x128xf32>
      %cst_33 = arith.constant dense<0xFF800000> : vector<2x32x128xf32>
      %24 = vector.multi_reduction <maximumf>, %23, %cst_33 [2] : vector<2x32x2x128xf32> to vector<2x32x128xf32>
      %cst_34 = arith.constant dense<0xFF800000> : vector<2x32xf32>
      %25 = vector.multi_reduction <maximumf>, %24, %cst_34 [2] : vector<2x32x128xf32> to vector<2x32xf32>
      %cst_35 = arith.constant 3.906250e-03 : f32
      %26 = vector.broadcast %cst_35 : f32 to vector<2x32xf32>
      %27 = arith.mulf %22, %26 : vector<2x32xf32>
      %28 = tpu.concatenate %27, %25 in 0 : vector<2x32xf32>, vector<2x32xf32> -> vector<4x32xf32>
      %c0_36 = arith.constant 0 : index
      %c0_37 = arith.constant 0 : index
      %29 = vector.load %arg3[%c0_36, %c0_37] : memref<32x8xf32, #tpu.memory_space<vmem>>, vector<32x8xf32>
      %c0_38 = arith.constant 0 : index
      %c0_39 = arith.constant 0 : index
      %30 = vector.load %arg4[%c0_38, %c0_39] : memref<8x32xf32, #tpu.memory_space<vmem>>, vector<8x32xf32>
      %cst_40 = arith.constant dense<0.000000e+00> : vector<4x8xf32>
      %31 = tpu.matmul %28, %29, %cst_40 {dimension_numbers = #tpu.dot_dimension_numbers<[1], [0], [0], [1], [0, 0, 1, 1], [], []>} : vector<4x32xf32>, vector<32x8xf32>, vector<4x8xf32> -> vector<4x8xf32>
      %cst_41 = arith.constant 0.000000e+00 : f32
      %32 = vector.broadcast %cst_41 : f32 to vector<4x8xf32>
      %33 = arith.maximumf %31, %32 : vector<4x8xf32>
      %cst_42 = arith.constant dense<0.000000e+00> : vector<4x32xf32>
      %34 = tpu.matmul %33, %30, %cst_42 {dimension_numbers = #tpu.dot_dimension_numbers<[1], [0], [0], [1], [0, 0, 1, 1], [], []>} : vector<4x8xf32>, vector<8x32xf32>, vector<4x32xf32> -> vector<4x32xf32>
      %35 = vector.extract_strided_slice %34 {offsets = [0, 0], sizes = [2, 32], strides = [1, 1]} : vector<4x32xf32> to vector<2x32xf32>
      %36 = vector.extract_strided_slice %34 {offsets = [2, 0], sizes = [2, 32], strides = [1, 1]} : vector<4x32xf32> to vector<2x32xf32>
      %37 = arith.addf %35, %36 : vector<2x32xf32>
      %38 = arith.negf %37 : vector<2x32xf32>
      %39 = math.exp %38 : vector<2x32xf32>
      %cst_43 = arith.constant 1.000000e+00 : f32
      %40 = vector.broadcast %cst_43 : f32 to vector<2x32xf32>
      %41 = arith.addf %40, %39 : vector<2x32xf32>
      %42 = arith.divf %40, %41 : vector<2x32xf32>
      %c0_44 = arith.constant 0 : index
      %c0_45 = arith.constant 0 : index
      %43 = vector.load %arg5[%c0_44, %c0_45] : memref<2x32xf32, #tpu.memory_space<vmem>>, vector<2x32xf32>
      tpu.vector_store %arg5[%c0_44, %c0_45], %42 {strides = array<i32>} : memref<2x32xf32, #tpu.memory_space<vmem>>, vector<2x32xf32>,
    } else {
    }
    return
  }
  func.func @transform_0(%arg0: i32, %arg1: i32) -> (i32, i32, i32, i32) {
    %c0_i32 = arith.constant 0 : i32
    %c0_i32_0 = arith.constant 0 : i32
    %c0_i32_1 = arith.constant 0 : i32
    return %arg0, %c0_i32, %arg1, %c0_i32_0 : i32, i32, i32, i32
  }
  func.func @transform_1(%arg0: i32, %arg1: i32) -> (i32, i32) {
    %c0_i32 = arith.constant 0 : i32
    %c0_i32_0 = arith.constant 0 : i32
    %c0_i32_1 = arith.constant 0 : i32
    return %c0_i32, %c0_i32_0 : i32, i32
  }
  func.func @transform_2(%arg0: i32, %arg1: i32) -> (i32, i32) {
    %c0_i32 = arith.constant 0 : i32
    %c0_i32_0 = arith.constant 0 : i32
    %c0_i32_1 = arith.constant 0 : i32
    return %c0_i32, %c0_i32_0 : i32, i32
  }
  func.func @transform_3(%arg0: i32, %arg1: i32) -> (i32, i32) {
    %c0_i32 = arith.constant 0 : i32
    %c0_i32_0 = arith.constant 0 : i32
    return %arg0, %c0_i32 : i32, i32
  }
}

</mosaic_0001>

<bundles_post_ra>
// kernel: tpu_custom_call.1
= control target key start
LH: loop header
LB: loop body
LE: loop exit
PB: predicated region body
PF: predicated region fallthrough
CT: control target
= control target key end

     0   :  { %8 = vsyncpa [#allocation5], 0  ;;  %s2942_s0 = inlined_call_operand.hbm [shape: f32[2,32,2,128], index: 0, kind: input, shape index: {}]   ;;  %s2943_s1 = inlined_call_operand.vmem [shape: f32[32,8], index: 1, kind: input, shape index: {}]   ;;  %s2944_s2 = inlined_call_operand.vmem [shape: f32[8,32], index: 2, kind: input, shape index: {}]   ;;  %s2945_s3 = inlined_call_operand.hbm [shape: f32[2,32], index: 3, kind: output, shape index: {}]  }
   0x1   :  { %9 = vsyncpa [#allocation6], 0  ;;  %s14_s14 = sshll.u32 %s2942_s0, 4  ;;  %s2288_s15 = smov [#allocation4]   ;;  %s15_s14 = int_to_ptr.hbm [resolvable:$true] %s14_s14 }
   0x2   :  { %s16_s16 = sshll.u32 %s2288_s15, 4  ;;  %s2289_s17 = smov 32   ;;  %s17_s16 = int_to_ptr.vmem [resolvable:$true] %s16_s16 }
   0x3   :  { %s2290_s18 = smov 2  }
   0x4   :  { %22 = dma.hbm_to_vmem [thread:$0]  %s15_s14, 2048, %s17_s16, [#allocation5], %s2289_s17, %s2289_s17, %s2290_s18  }
   0x5   :  { %2284 = dma.done.wait [#allocation5], 2048  }
   0x6   :  { %2285 = vsyncadd [#allocation5], 4294965248  ;;  %v2291_v0 = vmov 0.0   ;;  %v195_v1 = vld [vmem:[#allocation4 + $0x40] sm:$0x3]  ;;  %vm742_vm0 = vcmask 1041408  }
   0x7   :  { %67 = vst [vmem:[#allocation2 + $0x40] sm:$0x3] %v2291_v0  ;;  %v196_v2 = vld [vmem:[#allocation4 + $0x42] sm:$0x3]  ;;  %v197_v3 = vld [vmem:[#allocation4 + $0x44] sm:$0x3] }
   0x8   :  { %68 = vst [vmem:[#allocation2 + $0x42] sm:$0x3] %v2291_v0  ;;  %v198_v4 = vld [vmem:[#allocation4 + $0x46] sm:$0x3]  ;;  %v199_v5 = vld [vmem:[#allocation4 + $0x48] sm:$0x3] }
   0x9   :  { %69 = vst [vmem:[#allocation2 + $0x44] sm:$0x3] %v2291_v0  ;;  %v200_v8 = vld [vmem:[#allocation4 + $0x4a] sm:$0x3]  ;;  %v201_v13 = vld [vmem:[#allocation4 + $0x4c] sm:$0x3] }
   0xa   :  { %70 = vst [vmem:[#allocation2 + $0x46] sm:$0x3] %v2291_v0  ;;  %v202_v17 = vld [vmem:[#allocation4 + $0x4e] sm:$0x3]  ;;  %vm1255_vm1 = vcmask 1041409   ;;  %vm1257_vm2 = vcmask 1042434  }
   0xb   :  { %71 = vst [vmem:[#allocation2 + $0x48] sm:$0x3] %v2291_v0  ;;  %vm1259_vm3 = vcmask 1043459   ;;  %vm1261_vm4 = vcmask 1044484   ;;  %vm1263_vm5 = vcmask 1045509   ;;  %vm1265_vm6 = vcmask 1046534  }
   0xc   :  { %72 = vst [vmem:[#allocation2 + $0x4a] sm:$0x3] %v2291_v0  ;;  %vm1267_vm7 = vcmask 1047559   ;;  %vm2019_vm8 = vcmask 130112   ;;  %vm2023_vm9 = vcmask 195712   ;;  %vm2027_vm10 = vcmask 261312  }
   0xd   :  { %73 = vst [vmem:[#allocation2 + $0x4c] sm:$0x3] %v2291_v0  ;;  %vm2068_vm11 = vcmask 261120   ;;  %vm2093_vm12 = vcmask 64512   ;;  %s2149_s30 = sshll.u32 %s2945_s3, 4  ;;  %s2150_s30 = int_to_ptr.hbm [resolvable:$true] %s2149_s30 }
   0xe   :  { %74 = vst [vmem:[#allocation2 + $0x4e] sm:$0x3] %v2291_v0  ;;  %v323_v6 = vld [vmem:[#allocation2 + $0x40] sm:$0x3] }
   0xf   :  { %v324_v7 = vld [vmem:[#allocation2 + $0x42] sm:$0x3]  ;;  %v387_v11 = vadd.f32 %v323_v6, %v195_v1  ;;  %35 = vst [vmem:[#allocation2] sm:$0x3] %v2291_v0 }
  0x10   :  { %v325_v9 = vld [vmem:[#allocation2 + $0x44] sm:$0x3]  ;;  %v388_v12 = vadd.f32 %v324_v7, %v196_v2  ;;  %36 = vst [vmem:[#allocation2 + $0x2] sm:$0x3] %v2291_v0 }
  0x11   :  { %v326_v10 = vld [vmem:[#allocation2 + $0x46] sm:$0x3]  ;;  %v389_v15 = vadd.f32 %v325_v9, %v197_v3  ;;  %451 = vst [vmem:[#allocation2 + $0x40] sm:$0x3] %v387_v11 }
  0x12   :  { %v327_v14 = vld [vmem:[#allocation2 + $0x48] sm:$0x3]  ;;  %v390_v16 = vadd.f32 %v326_v10, %v198_v4  ;;  %452 = vst [vmem:[#allocation2 + $0x42] sm:$0x3] %v388_v12 }
  0x13   :  { %v328_v18 = vld [vmem:[#allocation2 + $0x4a] sm:$0x3]  ;;  %v391_v19 = vadd.f32 %v327_v14, %v199_v5  ;;  %453 = vst [vmem:[#allocation2 + $0x44] sm:$0x3] %v389_v15 }
  0x14   :  { %v329_v20 = vld [vmem:[#allocation2 + $0x4c] sm:$0x3]  ;;  %v392_v21 = vadd.f32 %v328_v18, %v200_v8  ;;  %454 = vst [vmem:[#allocation2 + $0x46] sm:$0x3] %v390_v16 }
  0x15   :  { %v330_v22 = vld [vmem:[#allocation2 + $0x4e] sm:$0x3]  ;;  %v393_v23 = vadd.f32 %v329_v20, %v201_v13  ;;  %455 = vst [vmem:[#allocation2 + $0x48] sm:$0x3] %v391_v19 }
  0x16   :  { %v394_v24 = vadd.f32 %v330_v22, %v202_v17  ;;  %456 = vst [vmem:[#allocation2 + $0x4a] sm:$0x3] %v392_v21 }
  0x17   :  { %457 = vst [vmem:[#allocation2 + $0x4c] sm:$0x3] %v393_v23 }
  0x18   :  { %458 = vst [vmem:[#allocation2 + $0x4e] sm:$0x3] %v394_v24  ;;  %v710_v25 = vld [vmem:[#allocation2 + $0x40] sm:$0x3] }
  0x19   :  { %v711_v26 = vld [vmem:[#allocation2 + $0x42] sm:$0x3]  ;;  %v967_v27 = vsel %vm742_vm0, %v710_v25, 0.0  ;;  %37 = vst [vmem:[#allocation2 + $0x4] sm:$0x3] %v2291_v0 }
  0x1a   :  { %v712_v28 = vld [vmem:[#allocation2 + $0x44] sm:$0x3]  ;;  %v968_v29 = vrot.slane %v967_v27, 4  ;;  %v974_v30 = vsel %vm742_vm0, %v711_v26, 0.0  ;;  %38 = vst [vmem:[#allocation2 + $0x6] sm:$0x3] %v2291_v0 }
  0x1b   :  { %v713_v31 = vld [vmem:[#allocation2 + $0x46] sm:$0x3]  ;;  %v975_v32 = vrot.slane %v974_v30, 4  ;;  %v981_v33 = vsel %vm742_vm0, %v712_v28, 0.0  ;;  %39 = vst [vmem:[#allocation2 + $0x8] sm:$0x3] %v2291_v0 }
  0x1c   :  { %v714_v34 = vld [vmem:[#allocation2 + $0x48] sm:$0x3]  ;;  %v969_v35 = vadd.f32 %v968_v29, %v967_v27  ;;  %v982_v36 = vrot.slane %v981_v33, 4  ;;  %v988_v37 = vsel %vm742_vm0, %v713_v31, 0.0  ;;  %40 = vst [vmem:[#allocation2 + $0xa] sm:$0x3] %v2291_v0 }
  0x1d   :  { %v715_v38 = vld [vmem:[#allocation2 + $0x4a] sm:$0x3]  ;;  %v976_v39 = vadd.f32 %v975_v32, %v974_v30  ;;  %v989_v40 = vrot.slane %v988_v37, 4  ;;  %v995_v41 = vsel %vm742_vm0, %v714_v34, 0.0  ;;  %41 = vst [vmem:[#allocation2 + $0xc] sm:$0x3] %v2291_v0 }
  0x1e   :  { %v716_v42 = vld [vmem:[#allocation2 + $0x4c] sm:$0x3]  ;;  %v970_v43 = vrot.slane %v969_v35, 2  ;;  %v983_v44 = vadd.f32 %v982_v36, %v981_v33  ;;  %v996_v45 = vrot.slane %v995_v41, 4  ;;  %v1002_v46 = vsel %vm742_vm0, %v715_v38, 0.0 }
  0x1f   :  { %v717_v47 = vld [vmem:[#allocation2 + $0x4e] sm:$0x3]  ;;  %v977_v48 = vrot.slane %v976_v39, 2  ;;  %v990_v49 = vadd.f32 %v989_v40, %v988_v37  ;;  %v1003_v50 = vrot.slane %v1002_v46, 4  ;;  %v1009_v51 = vsel %vm742_vm0, %v716_v42, 0.0 }
  0x20   :  { %v971_v52 = vadd.f32 %v970_v43, %v969_v35  ;;  %v984_v53 = vrot.slane %v983_v44, 2  ;;  %v997_v54 = vadd.f32 %v996_v45, %v995_v41  ;;  %v1010_v55 = vrot.slane %v1009_v51, 4  ;;  %42 = vst [vmem:[#allocation2 + $0xe] sm:$0x3] %v2291_v0  ;;  %v163_v33 = vld [vmem:[#allocation4] sm:$0x3] }
  0x21   :  { %v978_v56 = vadd.f32 %v977_v48, %v976_v39  ;;  %v991_v57 = vrot.slane %v990_v49, 2  ;;  %v1004_v58 = vadd.f32 %v1003_v50, %v1002_v46  ;;  %v1016_v59 = vsel %vm742_vm0, %v717_v47, 0.0  ;;  %43 = vst [vmem:[#allocation2 + $0x10] sm:$0x3] %v2291_v0  ;;  %v164_v34 = vld [vmem:[#allocation4 + $0x2] sm:$0x3] }
  0x22   :  { %v972_v60 = vrot.slane %v971_v52, 1  ;;  %v985_v61 = vadd.f32 %v984_v53, %v983_v44  ;;  %v998_v62 = vrot.slane %v997_v54, 2  ;;  %v1011_v63 = vadd.f32 %v1010_v55, %v1009_v51  ;;  %44 = vst [vmem:[#allocation2 + $0x12] sm:$0x3] %v2291_v0  ;;  %v165_v35 = vld [vmem:[#allocation4 + $0x4] sm:$0x3] }
  0x23   :  { %v979_v1 = vrot.slane %v978_v56, 1  ;;  %v992_v2 = vadd.f32 %v991_v57, %v990_v49  ;;  %v1005_v3 = vrot.slane %v1004_v58, 2  ;;  %v1017_v4 = vrot.slane %v1016_v59, 4  ;;  %45 = vst [vmem:[#allocation2 + $0x14] sm:$0x3] %v2291_v0 }
  0x24   :  { %v973_v5 = vadd.f32 %v972_v60, %v971_v52  ;;  %v986_v6 = vrot.slane %v985_v61, 1  ;;  %v999_v7 = vadd.f32 %v998_v62, %v997_v54  ;;  %v1012_v8 = vrot.slane %v1011_v63, 2  ;;  %46 = vst [vmem:[#allocation2 + $0x16] sm:$0x3] %v2291_v0  ;;  %v291_v36 = vld [vmem:[#allocation2] sm:$0x3] }
  0x25   :  { %v980_v9 = vadd.f32 %v979_v1, %v978_v56  ;;  %v993_v10 = vrot.slane %v992_v2, 1  ;;  %v1006_v11 = vadd.f32 %v1005_v3, %v1004_v58  ;;  %v1018_v12 = vadd.f32 %v1017_v4, %v1016_v59  ;;  %47 = vst [vmem:[#allocation2 + $0x18] sm:$0x3] %v2291_v0  ;;  %v166_v37 = vld [vmem:[#allocation4 + $0x6] sm:$0x3] }
  0x26   :  { %v987_v13 = vadd.f32 %v986_v6, %v985_v61  ;;  %v1000_v14 = vrot.slane %v999_v7, 1  ;;  %v1013_v15 = vadd.f32 %v1012_v8, %v1011_v63  ;;  %48 = vst [vmem:[#allocation2 + $0x1a] sm:$0x3] %v2291_v0  ;;  %v292_v38 = vld [vmem:[#allocation2 + $0x2] sm:$0x3]  ;;  %v355_v43 = vadd.f32 %v291_v36, %v163_v33 }
  0x27   :  { %v994_v16 = vadd.f32 %v993_v10, %v992_v2  ;;  %v1007_v17 = vrot.slane %v1006_v11, 1  ;;  %v1019_v18 = vrot.slane %v1018_v12, 2  ;;  %v1290_v19 = vsel %vm1255_vm1, %v980_v9, %v973_v5  ;;  %49 = vst [vmem:[#allocation2 + $0x1c] sm:$0x3] %v2291_v0  ;;  %v167_v39 = vld [vmem:[#allocation4 + $0x8] sm:$0x3] }
  0x28   :  { %v1001_v20 = vadd.f32 %v1000_v14, %v999_v7  ;;  %v1014_v21 = vrot.slane %v1013_v15, 1  ;;  %v1291_v22 = vsel %vm1257_vm2, %v987_v13, %v1290_v19  ;;  %50 = vst [vmem:[#allocation2 + $0x1e] sm:$0x3] %v2291_v0  ;;  %v293_v40 = vld [vmem:[#allocation2 + $0x4] sm:$0x3]  ;;  %v356_v47 = vadd.f32 %v292_v38, %v164_v34 }
  0x29   :  { %v1008_v23 = vadd.f32 %v1007_v17, %v1006_v11  ;;  %v1020_v24 = vadd.f32 %v1019_v18, %v1018_v12  ;;  %v1292_v25 = vsel %vm1259_vm3, %v994_v16, %v1291_v22  ;;  %51 = vst [vmem:[#allocation2 + $0x20] sm:$0x3] %v2291_v0  ;;  %v168_v41 = vld [vmem:[#allocation4 + $0xa] sm:$0x3]  ;;  %v294_v42 = vld [vmem:[#allocation2 + $0x6] sm:$0x3]  ;;  %v357_v51 = vadd.f32 %v293_v40, %v165_v35 }
  0x2a   :  { %v1015_v26 = vadd.f32 %v1014_v21, %v1013_v15  ;;  %v1293_v27 = vsel %vm1261_vm4, %v1001_v20, %v1292_v25  ;;  %52 = vst [vmem:[#allocation2 + $0x22] sm:$0x3] %v2291_v0  ;;  %v169_v44 = vld [vmem:[#allocation4 + $0xc] sm:$0x3]  ;;  %v295_v45 = vld [vmem:[#allocation2 + $0x8] sm:$0x3]  ;;  %v358_v52 = vadd.f32 %v294_v42, %v166_v37 }
  0x2b   :  { %v1021_v28 = vrot.slane %v1020_v24, 1  ;;  %v1294_v29 = vsel %vm1263_vm5, %v1008_v23, %v1293_v27  ;;  %53 = vst [vmem:[#allocation2 + $0x24] sm:$0x3] %v2291_v0  ;;  %v296_v46 = vld [vmem:[#allocation2 + $0xa] sm:$0x3]  ;;  %v359_v55 = vadd.f32 %v295_v45, %v167_v39 }
  0x2c   :  { %v1295_v30 = vsel %vm1265_vm6, %v1015_v26, %v1294_v29  ;;  %54 = vst [vmem:[#allocation2 + $0x26] sm:$0x3] %v2291_v0  ;;  %v170_v48 = vld [vmem:[#allocation4 + $0xe] sm:$0x3]  ;;  %v297_v49 = vld [vmem:[#allocation2 + $0xc] sm:$0x3]  ;;  %v360_v62 = vadd.f32 %v296_v46, %v168_v41 }
  0x2d   :  { %v1022_v31 = vadd.f32 %v1021_v28, %v1020_v24  ;;  %55 = vst [vmem:[#allocation2 + $0x28] sm:$0x3] %v2291_v0  ;;  %v298_v50 = vld [vmem:[#allocation2 + $0xe] sm:$0x3]  ;;  %v179_v53 = vld [vmem:[#allocation4 + $0x20] sm:$0x3]  ;;  %v361_v7 = vadd.f32 %v297_v49, %v169_v44 }
  0x2e   :  { %56 = vst [vmem:[#allocation2 + $0x2a] sm:$0x3] %v2291_v0  ;;  %v180_v56 = vld [vmem:[#allocation4 + $0x22] sm:$0x3]  ;;  %v181_v57 = vld [vmem:[#allocation4 + $0x24] sm:$0x3]  ;;  %v362_v16 = vadd.f32 %v298_v50, %v170_v48 }
  0x2f   :  { %v1296_v32 = vsel %vm1267_vm7, %v1022_v31, %v1295_v30  ;;  %57 = vst [vmem:[#allocation2 + $0x2c] sm:$0x3] %v2291_v0  ;;  %v182_v58 = vld [vmem:[#allocation4 + $0x26] sm:$0x3]  ;;  %v183_v63 = vld [vmem:[#allocation4 + $0x28] sm:$0x3] }
  0x30   :  { %1334 = vadd.xlane.f32.xlu1 %v1296_v32  ;;  %58 = vst [vmem:[#allocation2 + $0x2e] sm:$0x3] %v2291_v0  ;;  %v307_v54 = vld [vmem:[#allocation2 + $0x20] sm:$0x3]  ;;  %v184_v1 = vld [vmem:[#allocation4 + $0x2a] sm:$0x3] }
  0x31   :  { %59 = vst [vmem:[#allocation2 + $0x30] sm:$0x3] %v2291_v0  ;;  %v308_v59 = vld [vmem:[#allocation2 + $0x22] sm:$0x3]  ;;  %v185_v2 = vld [vmem:[#allocation4 + $0x2c] sm:$0x3]  ;;  %v371_v23 = vadd.f32 %v307_v54, %v179_v53 }
  0x32   :  { %60 = vst [vmem:[#allocation2 + $0x32] sm:$0x3] %v2291_v0  ;;  %v309_v60 = vld [vmem:[#allocation2 + $0x24] sm:$0x3]  ;;  %v186_v3 = vld [vmem:[#allocation4 + $0x2e] sm:$0x3]  ;;  %v372_v27 = vadd.f32 %v308_v59, %v180_v56 }
  0x33   :  { %61 = vst [vmem:[#allocation2 + $0x34] sm:$0x3] %v2291_v0  ;;  %v310_v61 = vld [vmem:[#allocation2 + $0x26] sm:$0x3]  ;;  %v203_v8 = vld [vmem:[#allocation4 + $0x50] sm:$0x3]  ;;  %v373_v28 = vadd.f32 %v309_v60, %v181_v57 }
  0x34   :  { %62 = vst [vmem:[#allocation2 + $0x36] sm:$0x3] %v2291_v0  ;;  %v311_v4 = vld [vmem:[#allocation2 + $0x28] sm:$0x3]  ;;  %v204_v9 = vld [vmem:[#allocation4 + $0x52] sm:$0x3]  ;;  %v374_v29 = vadd.f32 %v310_v61, %v182_v58 }
  0x35   :  { %63 = vst [vmem:[#allocation2 + $0x38] sm:$0x3] %v2291_v0  ;;  %v312_v5 = vld [vmem:[#allocation2 + $0x2a] sm:$0x3]  ;;  %v205_v10 = vld [vmem:[#allocation4 + $0x54] sm:$0x3]  ;;  %v375_v34 = vadd.f32 %v311_v4, %v183_v63 }
  0x36   :  { %64 = vst [vmem:[#allocation2 + $0x3a] sm:$0x3] %v2291_v0  ;;  %v206_v11 = vld [vmem:[#allocation4 + $0x56] sm:$0x3]  ;;  %v207_v17 = vld [vmem:[#allocation4 + $0x58] sm:$0x3]  ;;  %v376_v35 = vadd.f32 %v312_v5, %v184_v1 }
  0x37   :  { %65 = vst [vmem:[#allocation2 + $0x3c] sm:$0x3] %v2291_v0  ;;  %v314_v6 = vld [vmem:[#allocation2 + $0x2e] sm:$0x3]  ;;  %v208_v18 = vld [vmem:[#allocation4 + $0x5a] sm:$0x3] }
  0x38   :  { %66 = vst [vmem:[#allocation2 + $0x3e] sm:$0x3] %v2291_v0  ;;  %v209_v19 = vld [vmem:[#allocation4 + $0x5c] sm:$0x3]  ;;  %v210_v24 = vld [vmem:[#allocation4 + $0x5e] sm:$0x3]  ;;  %v2396_v37 = vadd.f32 %v314_v6, %v186_v3 }
  0x39   :  { %75 = vst [vmem:[#allocation2 + $0x50] sm:$0x3] %v2291_v0  ;;  %v171_v26 = vld [vmem:[#allocation4 + $0x10] sm:$0x3]  ;;  %v172_v30 = vld [vmem:[#allocation4 + $0x12] sm:$0x3] }
  0x3a   :  { %76 = vst [vmem:[#allocation2 + $0x52] sm:$0x3] %v2291_v0  ;;  %v173_v31 = vld [vmem:[#allocation4 + $0x14] sm:$0x3]  ;;  %v299_v32 = vld [vmem:[#allocation2 + $0x10] sm:$0x3] }
  0x3b   :  { %77 = vst [vmem:[#allocation2 + $0x54] sm:$0x3] %v2291_v0  ;;  %v300_v33 = vld [vmem:[#allocation2 + $0x12] sm:$0x3]  ;;  %v174_v38 = vld [vmem:[#allocation4 + $0x16] sm:$0x3]  ;;  %v2416_v57 = vadd.f32 %v299_v32, %v171_v26 }
  0x3c   :  { %78 = vst [vmem:[#allocation2 + $0x56] sm:$0x3] %v2291_v0  ;;  %v301_v39 = vld [vmem:[#allocation2 + $0x14] sm:$0x3]  ;;  %v302_v40 = vld [vmem:[#allocation2 + $0x16] sm:$0x3]  ;;  %v2419_v61 = vadd.f32 %v300_v33, %v172_v30 }
  0x3d   :  { %79 = vst [vmem:[#allocation2 + $0x58] sm:$0x3] %v2291_v0  ;;  %v175_v46 = vld [vmem:[#allocation4 + $0x18] sm:$0x3]  ;;  %v2424_v4 = vadd.f32 %v302_v40, %v174_v38 }
  0x3e   :  { %80 = vst [vmem:[#allocation2 + $0x5a] sm:$0x3] %v2291_v0 }
  0x3f   :  { %81 = vst [vmem:[#allocation2 + $0x5c] sm:$0x3] %v2291_v0 }
  0x40   :  { %82 = vst [vmem:[#allocation2 + $0x5e] sm:$0x3] %v2291_v0  ;;  %v331_v12 = vld [vmem:[#allocation2 + $0x50] sm:$0x3] }
  0x41   :  { %83 = vst [vmem:[#allocation2 + $0x60] sm:$0x3] %v2291_v0  ;;  %v332_v13 = vld [vmem:[#allocation2 + $0x52] sm:$0x3]  ;;  %v2398_v42 = vadd.f32 %v331_v12, %v203_v8 }
  0x42   :  { %84 = vst [vmem:[#allocation2 + $0x62] sm:$0x3] %v2291_v0  ;;  %v333_v14 = vld [vmem:[#allocation2 + $0x54] sm:$0x3] }
  0x43   :  { %85 = vst [vmem:[#allocation2 + $0x64] sm:$0x3] %v2291_v0  ;;  %v334_v15 = vld [vmem:[#allocation2 + $0x56] sm:$0x3]  ;;  %v2402_v44 = vadd.f32 %v333_v14, %v205_v10 }
  0x44   :  { %86 = vst [vmem:[#allocation2 + $0x66] sm:$0x3] %v2291_v0  ;;  %v335_v20 = vld [vmem:[#allocation2 + $0x58] sm:$0x3]  ;;  %v2404_v45 = vadd.f32 %v334_v15, %v206_v11 }
  0x45   :  { %87 = vst [vmem:[#allocation2 + $0x68] sm:$0x3] %v2291_v0  ;;  %v336_v21 = vld [vmem:[#allocation2 + $0x5a] sm:$0x3]  ;;  %v2407_v50 = vadd.f32 %v335_v20, %v207_v17 }
  0x46   :  { %88 = vst [vmem:[#allocation2 + $0x6a] sm:$0x3] %v2291_v0  ;;  %v337_v22 = vld [vmem:[#allocation2 + $0x5c] sm:$0x3] }
  0x47   :  { %89 = vst [vmem:[#allocation2 + $0x6c] sm:$0x3] %v2291_v0  ;;  %v338_v25 = vld [vmem:[#allocation2 + $0x5e] sm:$0x3] }
  0x48   :  { %90 = vst [vmem:[#allocation2 + $0x6e] sm:$0x3] %v2291_v0  ;;  %v2414_v56 = vadd.f32 %v338_v25, %v210_v24 }
  0x49   :  { %91 = vst [vmem:[#allocation2 + $0x70] sm:$0x3] %v2291_v0 }
  0x4a   :  { %92 = vst [vmem:[#allocation2 + $0x72] sm:$0x3] %v2291_v0 }
  0x4b   :  { %93 = vst [vmem:[#allocation2 + $0x74] sm:$0x3] %v2291_v0 }
  0x4c   :  { %94 = vst [vmem:[#allocation2 + $0x76] sm:$0x3] %v2291_v0 }
  0x4d   :  { %95 = vst [vmem:[#allocation2 + $0x78] sm:$0x3] %v2291_v0 }
  0x4e   :  { %96 = vst [vmem:[#allocation2 + $0x7a] sm:$0x3] %v2291_v0 }
  0x4f   :  { %97 = vst [vmem:[#allocation2 + $0x7c] sm:$0x3] %v2291_v0 }
  0x50   :  { %98 = vst [vmem:[#allocation2 + $0x7e] sm:$0x3] %v2291_v0  ;;  %v313_v0 = vld [vmem:[#allocation2 + $0x2c] sm:$0x3] }
  0x51   :  { %419 = vst [vmem:[#allocation2] sm:$0x3] %v355_v43  ;;  %v377_v36 = vadd.f32 %v313_v0, %v185_v2  ;;  %v2400_v43 = vadd.f32 %v332_v13, %v204_v9 }
  0x52   :  { %420 = vst [vmem:[#allocation2 + $0x2] sm:$0x3] %v356_v47  ;;  %v303_v47 = vld [vmem:[#allocation2 + $0x18] sm:$0x3] }
  0x53   :  { %421 = vst [vmem:[#allocation2 + $0x4] sm:$0x3] %v357_v51  ;;  %v2409_v51 = vadd.f32 %v336_v21, %v208_v18  ;;  %v2427_v8 = vadd.f32 %v303_v47, %v175_v46 }
  0x54   :  { %422 = vst [vmem:[#allocation2 + $0x6] sm:$0x3] %v358_v52  ;;  %v2411_v52 = vadd.f32 %v337_v22, %v209_v19 }
  0x55   :  { %423 = vst [vmem:[#allocation2 + $0x8] sm:$0x3] %v359_v55 }
  0x56   :  { %424 = vst [vmem:[#allocation2 + $0xa] sm:$0x3] %v360_v62  ;;  %v2421_v62 = vadd.f32 %v301_v39, %v173_v31 }
  0x57   :  { %425 = vst [vmem:[#allocation2 + $0xc] sm:$0x3] %v361_v7 }
  0x58   :  { %426 = vst [vmem:[#allocation2 + $0xe] sm:$0x3] %v362_v16  ;;  %v678_v41 = vld [vmem:[#allocation2] sm:$0x3] }
  0x59   :  { %v679_v48 = vld [vmem:[#allocation2 + $0x2] sm:$0x3]  ;;  %v743_v49 = vsel %vm742_vm0, %v678_v41, 0.0  ;;  %435 = vst [vmem:[#allocation2 + $0x20] sm:$0x3] %v371_v23 }
  0x5a   :  { %v680_v53 = vld [vmem:[#allocation2 + $0x4] sm:$0x3]  ;;  %v744_v54 = vrot.slane %v743_v49, 4  ;;  %v750_v55 = vsel %vm742_vm0, %v679_v48, 0.0  ;;  %436 = vst [vmem:[#allocation2 + $0x22] sm:$0x3] %v372_v27 }
  0x5b   :  { %v681_v58 = vld [vmem:[#allocation2 + $0x6] sm:$0x3]  ;;  %v751_v59 = vrot.slane %v750_v55, 4  ;;  %v757_v60 = vsel %vm742_vm0, %v680_v53, 0.0  ;;  %437 = vst [vmem:[#allocation2 + $0x24] sm:$0x3] %v373_v28 }
  0x5c   :  { %v682_v63 = vld [vmem:[#allocation2 + $0x8] sm:$0x3]  ;;  %v745_v1 = vadd.f32 %v744_v54, %v743_v49  ;;  %v758_v2 = vrot.slane %v757_v60, 4  ;;  %v764_v3 = vsel %vm742_vm0, %v681_v58, 0.0  ;;  %438 = vst [vmem:[#allocation2 + $0x26] sm:$0x3] %v374_v29 }
  0x5d   :  { %v683_v5 = vld [vmem:[#allocation2 + $0xa] sm:$0x3]  ;;  %v752_v0 = vadd.f32 %v751_v59, %v750_v55  ;;  %v765_v6 = vrot.slane %v764_v3, 4  ;;  %v771_v7 = vsel %vm742_vm0, %v682_v63, 0.0  ;;  %439 = vst [vmem:[#allocation2 + $0x28] sm:$0x3] %v375_v34 }
  0x5e   :  { %v684_v9 = vld [vmem:[#allocation2 + $0xc] sm:$0x3]  ;;  %v746_v10 = vrot.slane %v745_v1, 2  ;;  %v759_v11 = vadd.f32 %v758_v2, %v757_v60  ;;  %v772_v12 = vrot.slane %v771_v7, 4  ;;  %v778_v13 = vsel %vm742_vm0, %v683_v5, 0.0 }
  0x5f   :  { %v685_v14 = vld [vmem:[#allocation2 + $0xe] sm:$0x3]  ;;  %v753_v15 = vrot.slane %v752_v0, 2  ;;  %v766_v16 = vadd.f32 %v765_v6, %v764_v3  ;;  %v779_v17 = vrot.slane %v778_v13, 4  ;;  %v785_v18 = vsel %vm742_vm0, %v684_v9, 0.0 }
  0x60   :  { %v747_v19 = vadd.f32 %v746_v10, %v745_v1  ;;  %v760_v20 = vrot.slane %v759_v11, 2  ;;  %v773_v21 = vadd.f32 %v772_v12, %v771_v7  ;;  %v786_v22 = vrot.slane %v785_v18, 4  ;;  %440 = vst [vmem:[#allocation2 + $0x2a] sm:$0x3] %v376_v35  ;;  %v694_v38 = vld [vmem:[#allocation2 + $0x20] sm:$0x3] }
  0x61   :  { %v754_v23 = vadd.f32 %v753_v15, %v752_v0  ;;  %v767_v24 = vrot.slane %v766_v16, 2  ;;  %v780_v25 = vadd.f32 %v779_v17, %v778_v13  ;;  %v792_v26 = vsel %vm742_vm0, %v685_v14, 0.0  ;;  %441 = vst [vmem:[#allocation2 + $0x2c] sm:$0x3] %v377_v36  ;;  %v695_v54 = vld [vmem:[#allocation2 + $0x22] sm:$0x3] }
  0x62   :  { %v748_v27 = vrot.slane %v747_v19, 1  ;;  %v761_v28 = vadd.f32 %v760_v20, %v759_v11  ;;  %v774_v29 = vrot.slane %v773_v21, 2  ;;  %v787_v30 = vadd.f32 %v786_v22, %v785_v18  ;;  %442 = vst [vmem:[#allocation2 + $0x2e] sm:$0x3] %v2396_v37 }
  0x63   :  { %v755_v31 = vrot.slane %v754_v23, 1  ;;  %v768_v32 = vadd.f32 %v767_v24, %v766_v16  ;;  %v781_v33 = vrot.slane %v780_v25, 2  ;;  %v793_v34 = vrot.slane %v792_v26, 4  ;;  %459 = vst [vmem:[#allocation2 + $0x50] sm:$0x3] %v2398_v42 }
  0x64   :  { %v749_v39 = vadd.f32 %v748_v27, %v747_v19  ;;  %v762_v40 = vrot.slane %v761_v28, 1  ;;  %v775_v35 = vadd.f32 %v774_v29, %v773_v21  ;;  %v788_v41 = vrot.slane %v787_v30, 2  ;;  %460 = vst [vmem:[#allocation2 + $0x52] sm:$0x3] %v2400_v43  ;;  %v696_v42 = vld [vmem:[#allocation2 + $0x24] sm:$0x3] }
  0x65   :  { %v756_v46 = vadd.f32 %v755_v31, %v754_v23  ;;  %v769_v47 = vrot.slane %v768_v32, 1  ;;  %v782_v36 = vadd.f32 %v781_v33, %v780_v25  ;;  %v794_v48 = vadd.f32 %v793_v34, %v792_v26  ;;  %461 = vst [vmem:[#allocation2 + $0x54] sm:$0x3] %v2402_v44  ;;  %v697_v3 = vld [vmem:[#allocation2 + $0x26] sm:$0x3] }
  0x66   :  { %v763_v49 = vadd.f32 %v762_v40, %v761_v28  ;;  %v776_v53 = vrot.slane %v775_v35, 1  ;;  %v789_v37 = vadd.f32 %v788_v41, %v787_v30  ;;  %v855_v55 = vsel %vm742_vm0, %v694_v38, 0.0  ;;  %462 = vst [vmem:[#allocation2 + $0x56] sm:$0x3] %v2404_v45  ;;  %v698_v7 = vld [vmem:[#allocation2 + $0x28] sm:$0x3] }
  0x67   :  { %v770_v58 = vadd.f32 %v769_v47, %v768_v32  ;;  %v783_v59 = vrot.slane %v782_v36, 1  ;;  %v795_v60 = vrot.slane %v794_v48, 2  ;;  %v1256_v63 = vsel %vm1255_vm1, %v756_v46, %v749_v39  ;;  %463 = vst [vmem:[#allocation2 + $0x58] sm:$0x3] %v2407_v50  ;;  %v699_v11 = vld [vmem:[#allocation2 + $0x2a] sm:$0x3] }
  0x68   :  { %v777_v1 = vadd.f32 %v776_v53, %v775_v35  ;;  %v790_v2 = vrot.slane %v789_v37, 1  ;;  %v1258_v43 = vsel %vm1257_vm2, %v763_v49, %v1256_v63  ;;  %v856_v5 = vrot.slane %v855_v55, 4  ;;  %464 = vst [vmem:[#allocation2 + $0x5a] sm:$0x3] %v2409_v51  ;;  %v700_v51 = vld [vmem:[#allocation2 + $0x2c] sm:$0x3] }
  0x69   :  { %v784_v0 = vadd.f32 %v783_v59, %v782_v36  ;;  %v796_v6 = vadd.f32 %v795_v60, %v794_v48  ;;  %v1260_v44 = vsel %vm1259_vm3, %v770_v58, %v1258_v43  ;;  %v862_v9 = vsel %vm742_vm0, %v695_v54, 0.0  ;;  %465 = vst [vmem:[#allocation2 + $0x5c] sm:$0x3] %v2411_v52  ;;  %v701_v24 = vld [vmem:[#allocation2 + $0x2e] sm:$0x3] }
  0x6a   :  { %v791_v10 = vadd.f32 %v790_v2, %v789_v37  ;;  %v1262_v45 = vsel %vm1261_vm4, %v777_v1, %v1260_v44  ;;  %v857_v12 = vadd.f32 %v856_v5, %v855_v55  ;;  %v863_v13 = vrot.slane %v862_v9, 4  ;;  %466 = vst [vmem:[#allocation2 + $0x5e] sm:$0x3] %v2414_v56  ;;  %v718_v41 = vld [vmem:[#allocation2 + $0x50] sm:$0x3] }
  0x6b   :  { %v797_v14 = vrot.slane %v796_v6, 1  ;;  %v1264_v50 = vsel %vm1263_vm5, %v784_v0, %v1262_v45  ;;  %v869_v15 = vsel %vm742_vm0, %v696_v42, 0.0  ;;  %v876_v16 = vsel %vm742_vm0, %v697_v3, 0.0  ;;  %427 = vst [vmem:[#allocation2 + $0x10] sm:$0x3] %v2416_v57 }
  0x6c   :  { %v1266_v17 = vsel %vm1265_vm6, %v791_v10, %v1264_v50  ;;  %v858_v18 = vrot.slane %v857_v12, 2  ;;  %v864_v19 = vadd.f32 %v863_v13, %v862_v9  ;;  %v870_v20 = vrot.slane %v869_v15, 4  ;;  %428 = vst [vmem:[#allocation2 + $0x12] sm:$0x3] %v2419_v61  ;;  %v719_v1 = vld [vmem:[#allocation2 + $0x52] sm:$0x3] }
  0x6d   :  { %v798_v21 = vadd.f32 %v797_v14, %v796_v6  ;;  %v877_v22 = vrot.slane %v876_v16, 4  ;;  %v883_v23 = vsel %vm742_vm0, %v698_v7, 0.0  ;;  %v890_v52 = vsel %vm742_vm0, %v699_v11, 0.0  ;;  %429 = vst [vmem:[#allocation2 + $0x14] sm:$0x3] %v2421_v62 }
  0x6e   :  { %v859_v25 = vadd.f32 %v858_v18, %v857_v12  ;;  %v865_v26 = vrot.slane %v864_v19, 2  ;;  %v871_v27 = vadd.f32 %v870_v20, %v869_v15  ;;  %v884_v28 = vrot.slane %v883_v23, 4  ;;  %430 = vst [vmem:[#allocation2 + $0x16] sm:$0x3] %v2424_v4  ;;  %v721_v50 = vld [vmem:[#allocation2 + $0x56] sm:$0x3] }
  0x6f   :  { %v1268_v56 = vsel %vm1267_vm7, %v798_v21, %v1266_v17  ;;  %v878_v29 = vadd.f32 %v877_v22, %v876_v16  ;;  %v891_v30 = vrot.slane %v890_v52, 4  ;;  %v897_v31 = vsel %vm742_vm0, %v700_v51, 0.0  ;;  %431 = vst [vmem:[#allocation2 + $0x18] sm:$0x3] %v2427_v8  ;;  %v720_v8 = vld [vmem:[#allocation2 + $0x54] sm:$0x3] }
  0x70   :  { %1326 = vadd.xlane.f32.xlu0 %v1268_v56  ;;  %v860_v32 = vrot.slane %v859_v25, 1  ;;  %v866_v33 = vadd.f32 %v865_v26, %v864_v19  ;;  %v872_v34 = vrot.slane %v871_v27, 2  ;;  %v885_v38 = vadd.f32 %v884_v28, %v883_v23  ;;  %v722_v15 = vld [vmem:[#allocation2 + $0x58] sm:$0x3]  ;;  %v723_v22 = vld [vmem:[#allocation2 + $0x5a] sm:$0x3] }
  0x71   :  { %v879_v39 = vrot.slane %v878_v29, 2  ;;  %v892_v40 = vadd.f32 %v891_v30, %v890_v52  ;;  %v898_v35 = vrot.slane %v897_v31, 4  ;;  %v904_v57 = vsel %vm742_vm0, %v701_v24, 0.0  ;;  %v724_v56 = vld [vmem:[#allocation2 + $0x5c] sm:$0x3] }
  0x72   :  { %v861_v46 = vadd.f32 %v860_v32, %v859_v25  ;;  %v867_v47 = vrot.slane %v866_v33, 1  ;;  %v873_v36 = vadd.f32 %v872_v34, %v871_v27  ;;  %v886_v48 = vrot.slane %v885_v38, 2 }
  0x73   :  { %v880_v61 = vadd.f32 %v879_v39, %v878_v29  ;;  %v893_v49 = vrot.slane %v892_v40, 2  ;;  %v899_v53 = vadd.f32 %v898_v35, %v897_v31  ;;  %v905_v37 = vrot.slane %v904_v57, 4 }
  0x74   :  { %v868_v54 = vadd.f32 %v867_v47, %v866_v33  ;;  %v874_v62 = vrot.slane %v873_v36, 1  ;;  %v887_v55 = vadd.f32 %v886_v48, %v885_v38  ;;  %v1023_v58 = vsel %vm742_vm0, %v718_v41, 0.0  ;;  %v176_v38 = vld [vmem:[#allocation4 + $0x1a] sm:$0x3] }
  0x75   :  { %v881_v59 = vrot.slane %v880_v61, 1  ;;  %v894_v60 = vadd.f32 %v893_v49, %v892_v40  ;;  %v900_v63 = vrot.slane %v899_v53, 2  ;;  %v906_v42 = vadd.f32 %v905_v37, %v904_v57  ;;  %v725_v40 = vld [vmem:[#allocation2 + $0x5e] sm:$0x3] }
  0x76   :  { %v875_v2 = vadd.f32 %v874_v62, %v873_v36  ;;  %v888_v43 = vrot.slane %v887_v55, 1  ;;  %v1276_v4 = vsel %vm1255_vm1, %v868_v54, %v861_v46  ;;  %v1024_v3 = vrot.slane %v1023_v58, 4  ;;  %v304_v46 = vld [vmem:[#allocation2 + $0x1a] sm:$0x3]  ;;  %v177_v62 = vld [vmem:[#allocation4 + $0x1c] sm:$0x3] }
  0x77   :  { %v882_v5 = vadd.f32 %v881_v59, %v880_v61  ;;  %v895_v0 = vrot.slane %v894_v60, 1  ;;  %v901_v6 = vadd.f32 %v900_v63, %v899_v53  ;;  %v907_v44 = vrot.slane %v906_v42, 2 }
  0x78   :  { %v889_v7 = vadd.f32 %v888_v43, %v887_v55  ;;  %v1277_v9 = vsel %vm1257_vm2, %v875_v2, %v1276_v4  ;;  %v1025_v10 = vadd.f32 %v1024_v3, %v1023_v58  ;;  %v1030_v45 = vsel %vm742_vm0, %v719_v1, 0.0  ;;  %v305_v55 = vld [vmem:[#allocation2 + $0x1c] sm:$0x3]  ;;  %v178_v4 = vld [vmem:[#allocation4 + $0x1e] sm:$0x3] }
  0x79   :  { %v896_v11 = vadd.f32 %v895_v0, %v894_v60  ;;  %v902_v12 = vrot.slane %v901_v6, 1  ;;  %v908_v13 = vadd.f32 %v907_v44, %v906_v42  ;;  %v1278_v14 = vsel %vm1259_vm3, %v882_v5, %v1277_v9  ;;  %v306_v3 = vld [vmem:[#allocation2 + $0x1e] sm:$0x3] }
  0x7a   :  { %v1279_v16 = vsel %vm1261_vm4, %v889_v7, %v1278_v14  ;;  %v1026_v17 = vrot.slane %v1025_v10, 2  ;;  %v1031_v51 = vrot.slane %v1030_v45, 4  ;;  %v1037_v18 = vsel %vm742_vm0, %v720_v8, 0.0 }
  0x7b   :  { %v903_v19 = vadd.f32 %v902_v12, %v901_v6  ;;  %v909_v20 = vrot.slane %v908_v13, 1  ;;  %v1280_v21 = vsel %vm1263_vm5, %v896_v11, %v1279_v16  ;;  %v1038_v23 = vrot.slane %v1037_v18, 4  ;;  %v687_v11 = vld [vmem:[#allocation2 + $0x12] sm:$0x3] }
  0x7c   :  { %v1027_v52 = vadd.f32 %v1026_v17, %v1025_v10  ;;  %v1032_v24 = vadd.f32 %v1031_v51, %v1030_v45  ;;  %v1044_v25 = vsel %vm742_vm0, %v721_v50, 0.0  ;;  %v1051_v26 = vsel %vm742_vm0, %v722_v15, 0.0  ;;  %v686_v45 = vld [vmem:[#allocation2 + $0x10] sm:$0x3] }
  0x7d   :  { %v910_v27 = vadd.f32 %v909_v20, %v908_v13  ;;  %v1281_v28 = vsel %vm1265_vm6, %v903_v19, %v1280_v21  ;;  %v1039_v29 = vadd.f32 %v1038_v23, %v1037_v18  ;;  %v1045_v30 = vrot.slane %v1044_v25, 4  ;;  %v688_v18 = vld [vmem:[#allocation2 + $0x14] sm:$0x3] }
  0x7e   :  { %v1028_v31 = vrot.slane %v1027_v52, 1  ;;  %v1033_v32 = vrot.slane %v1032_v24, 2  ;;  %v1052_v33 = vrot.slane %v1051_v26, 4  ;;  %v1058_v34 = vsel %vm742_vm0, %v723_v22, 0.0 }
  0x7f   :  { %v1282_v39 = vsel %vm1267_vm7, %v910_v27, %v1281_v28  ;;  %v1040_v35 = vrot.slane %v1039_v29, 2  ;;  %v1046_v57 = vadd.f32 %v1045_v30, %v1044_v25  ;;  %v1059_v41 = vrot.slane %v1058_v34, 4  ;;  %v689_v25 = vld [vmem:[#allocation2 + $0x16] sm:$0x3] }
  0x80   :  { %1330 = vadd.xlane.f32.xlu2 %v1282_v39  ;;  %v1029_v47 = vadd.f32 %v1028_v31, %v1027_v52  ;;  %v1034_v36 = vadd.f32 %v1033_v32, %v1032_v24  ;;  %v1053_v48 = vadd.f32 %v1052_v33, %v1051_v26  ;;  %v1065_v61 = vsel %vm742_vm0, %v724_v56, 0.0  ;;  %v690_v26 = vld [vmem:[#allocation2 + $0x18] sm:$0x3] }
  0x81   :  { %v1041_v49 = vadd.f32 %v1040_v35, %v1039_v29  ;;  %v1047_v53 = vrot.slane %v1046_v57, 2  ;;  %v1060_v37 = vadd.f32 %v1059_v41, %v1058_v34  ;;  %v1066_v54 = vrot.slane %v1065_v61, 4 }
  0x82   :  { %v1035_v58 = vrot.slane %v1034_v36, 1  ;;  %v1054_v59 = vrot.slane %v1053_v48, 2  ;;  %v1072_v60 = vsel %vm742_vm0, %v725_v40, 0.0  ;;  %v368_v63 = vadd.f32 %v304_v46, %v176_v38 }
  0x83   :  { %v1042_v42 = vrot.slane %v1041_v49, 1  ;;  %v1048_v1 = vadd.f32 %v1047_v53, %v1046_v57  ;;  %v1061_v2 = vrot.slane %v1060_v37, 2  ;;  %v1067_v43 = vadd.f32 %v1066_v54, %v1065_v61 }
  0x84   :  { %v1036_v5 = vadd.f32 %v1035_v58, %v1034_v36  ;;  %v1055_v0 = vadd.f32 %v1054_v59, %v1053_v48  ;;  %v1073_v6 = vrot.slane %v1072_v60, 4  ;;  %v369_v44 = vadd.f32 %v305_v55, %v177_v62  ;;  %432 = vst [vmem:[#allocation2 + $0x1a] sm:$0x3] %v368_v63 }
  0x85   :  { %v1043_v8 = vadd.f32 %v1042_v42, %v1041_v49  ;;  %v1049_v7 = vrot.slane %v1048_v1, 1  ;;  %v1062_v9 = vadd.f32 %v1061_v2, %v1060_v37  ;;  %v1068_v10 = vrot.slane %v1067_v43, 2 }
  0x86   :  { %v1056_v12 = vrot.slane %v1055_v0, 1  ;;  %v1074_v13 = vadd.f32 %v1073_v6, %v1072_v60  ;;  %v1297_v14 = vsel %vm1255_vm1, %v1036_v5, %v1029_v47  ;;  %v370_v50 = vadd.f32 %v306_v3, %v178_v4  ;;  %433 = vst [vmem:[#allocation2 + $0x1c] sm:$0x3] %v369_v44  ;;  %v211_v5 = vld [vmem:[#allocation4 + $0x60] sm:$0x3] }
  0x87   :  { %v1050_v15 = vadd.f32 %v1049_v7, %v1048_v1  ;;  %v1063_v16 = vrot.slane %v1062_v9, 1  ;;  %v1069_v17 = vadd.f32 %v1068_v10, %v1067_v43  ;;  %v1298_v51 = vsel %vm1257_vm2, %v1043_v8, %v1297_v14  ;;  %v212_v7 = vld [vmem:[#allocation4 + $0x62] sm:$0x3] }
  0x88   :  { %v1057_v19 = vadd.f32 %v1056_v12, %v1055_v0  ;;  %v1075_v20 = vrot.slane %v1074_v13, 2  ;;  %434 = vst [vmem:[#allocation2 + $0x1e] sm:$0x3] %v370_v50  ;;  %v799_v21 = vsel %vm742_vm0, %v686_v45, 0.0  ;;  %v806_v22 = vsel %vm742_vm0, %v687_v11, 0.0 }
  0x89   :  { %v1064_v23 = vadd.f32 %v1063_v16, %v1062_v9  ;;  %v1070_v52 = vrot.slane %v1069_v17, 1  ;;  %v1299_v24 = vsel %vm1259_vm3, %v1050_v15, %v1298_v51  ;;  %v800_v27 = vrot.slane %v799_v21, 4  ;;  %v339_v9 = vld [vmem:[#allocation2 + $0x60] sm:$0x3]  ;;  %v340_v14 = vld [vmem:[#allocation2 + $0x62] sm:$0x3] }
  0x8a   :  { %v1076_v28 = vadd.f32 %v1075_v20, %v1074_v13  ;;  %v1300_v56 = vsel %vm1261_vm4, %v1057_v19, %v1299_v24  ;;  %v807_v29 = vrot.slane %v806_v22, 4  ;;  %v813_v30 = vsel %vm742_vm0, %v688_v18, 0.0  ;;  %v213_v13 = vld [vmem:[#allocation4 + $0x64] sm:$0x3]  ;;  %v214_v51 = vld [vmem:[#allocation4 + $0x66] sm:$0x3] }
  0x8b   :  { %v1071_v31 = vadd.f32 %v1070_v52, %v1069_v17  ;;  %v1301_v32 = vsel %vm1263_vm5, %v1064_v23, %v1300_v56  ;;  %v691_v33 = vld [vmem:[#allocation2 + $0x1a] sm:$0x3]  ;;  %v801_v34 = vadd.f32 %v800_v27, %v799_v21  ;;  %v814_v38 = vrot.slane %v813_v30, 4  ;;  %v215_v18 = vld [vmem:[#allocation4 + $0x68] sm:$0x3] }
  0x8c   :  { %v1077_v39 = vrot.slane %v1076_v28, 1  ;;  %v808_v40 = vadd.f32 %v807_v29, %v806_v22  ;;  %v820_v35 = vsel %vm742_vm0, %v689_v25, 0.0  ;;  %v827_v57 = vsel %vm742_vm0, %v690_v26, 0.0  ;;  %v341_v19 = vld [vmem:[#allocation2 + $0x64] sm:$0x3] }
  0x8d   :  { %v1302_v41 = vsel %vm1265_vm6, %v1071_v31, %v1301_v32  ;;  %v692_v46 = vld [vmem:[#allocation2 + $0x1c] sm:$0x3]  ;;  %v802_v47 = vrot.slane %v801_v34, 2  ;;  %v815_v36 = vadd.f32 %v814_v38, %v813_v30  ;;  %v821_v48 = vrot.slane %v820_v35, 4  ;;  %v342_v20 = vld [vmem:[#allocation2 + $0x66] sm:$0x3] }
  0x8e   :  { %v1078_v61 = vadd.f32 %v1077_v39, %v1076_v28  ;;  %v809_v49 = vrot.slane %v808_v40, 2  ;;  %v828_v53 = vrot.slane %v827_v57, 4  ;;  %v834_v37 = vsel %vm742_vm0, %v691_v33, 0.0  ;;  %v216_v52 = vld [vmem:[#allocation4 + $0x6a] sm:$0x3] }
  0x8f   :  { %v693_v54 = vld [vmem:[#allocation2 + $0x1e] sm:$0x3]  ;;  %v803_v62 = vadd.f32 %v802_v47, %v801_v34  ;;  %v816_v55 = vrot.slane %v815_v36, 2  ;;  %v822_v58 = vadd.f32 %v821_v48, %v820_v35  ;;  %v835_v59 = vrot.slane %v834_v37, 4  ;;  %v343_v24 = vld [vmem:[#allocation2 + $0x68] sm:$0x3] }
  0x90   :  { %v1303_v60 = vsel %vm1267_vm7, %v1078_v61, %v1302_v41  ;;  %v810_v63 = vadd.f32 %v809_v49, %v808_v40  ;;  %v829_v42 = vadd.f32 %v828_v53, %v827_v57  ;;  %v841_v1 = vsel %vm742_vm0, %v692_v46, 0.0  ;;  %v344_v25 = vld [vmem:[#allocation2 + $0x6a] sm:$0x3]  ;;  %v217_v30 = vld [vmem:[#allocation4 + $0x6c] sm:$0x3] }
  0x91   :  { %1336 = vadd.xlane.f32.xlu1 %v1303_v60  ;;  %v804_v2 = vrot.slane %v803_v62, 1  ;;  %v817_v43 = vadd.f32 %v816_v55, %v815_v36  ;;  %v823_v4 = vrot.slane %v822_v58, 2  ;;  %v836_v3 = vadd.f32 %v835_v59, %v834_v37  ;;  %v218_v31 = vld [vmem:[#allocation4 + $0x6e] sm:$0x3]  ;;  %v345_v32 = vld [vmem:[#allocation2 + $0x6c] sm:$0x3] }
  0x92   :  { %v811_v0 = vrot.slane %v810_v63, 1  ;;  %v830_v6 = vrot.slane %v829_v42, 2  ;;  %v842_v44 = vrot.slane %v841_v1, 4  ;;  %v848_v8 = vsel %vm742_vm0, %v693_v54, 0.0  ;;  %v346_v33 = vld [vmem:[#allocation2 + $0x6e] sm:$0x3] }
  0x93   :  { %v805_v10 = vadd.f32 %v804_v2, %v803_v62  ;;  %v818_v45 = vrot.slane %v817_v43, 1  ;;  %v824_v11 = vadd.f32 %v823_v4, %v822_v58  ;;  %v837_v12 = vrot.slane %v836_v3, 2  ;;  %v219_v35 = vld [vmem:[#allocation4 + $0x70] sm:$0x3]  ;;  %v220_v48 = vld [vmem:[#allocation4 + $0x72] sm:$0x3] }
  0x94   :  { %v812_v50 = vadd.f32 %v811_v0, %v810_v63  ;;  %v831_v15 = vadd.f32 %v830_v6, %v829_v42  ;;  %v843_v16 = vadd.f32 %v842_v44, %v841_v1  ;;  %v849_v17 = vrot.slane %v848_v8, 4  ;;  %v347_v57 = vld [vmem:[#allocation2 + $0x70] sm:$0x3]  ;;  %v221_v61 = vld [vmem:[#allocation4 + $0x74] sm:$0x3] }
  0x95   :  { %v819_v21 = vadd.f32 %v818_v45, %v817_v43  ;;  %v825_v22 = vrot.slane %v824_v11, 1  ;;  %v838_v23 = vadd.f32 %v837_v12, %v836_v3  ;;  %v403_v26 = vadd.f32 %v339_v9, %v211_v5  ;;  %v348_v49 = vld [vmem:[#allocation2 + $0x72] sm:$0x3]  ;;  %v349_v53 = vld [vmem:[#allocation2 + $0x74] sm:$0x3] }
  0x96   :  { %v832_v27 = vrot.slane %v831_v15, 1  ;;  %v844_v28 = vrot.slane %v843_v16, 2  ;;  %v850_v56 = vadd.f32 %v849_v17, %v848_v8  ;;  %v1269_v29 = vsel %vm1255_vm1, %v812_v50, %v805_v10  ;;  %v222_v58 = vld [vmem:[#allocation4 + $0x76] sm:$0x3]  ;;  %v223_v59 = vld [vmem:[#allocation4 + $0x78] sm:$0x3] }
  0x97   :  { %v826_v34 = vadd.f32 %v825_v22, %v824_v11  ;;  %v839_v38 = vrot.slane %v838_v23, 1  ;;  %v1270_v39 = vsel %vm1257_vm2, %v819_v21, %v1269_v29  ;;  %v404_v40 = vadd.f32 %v340_v14, %v212_v7  ;;  %467 = vst [vmem:[#allocation2 + $0x60] sm:$0x3] %v403_v26  ;;  %v350_v60 = vld [vmem:[#allocation2 + $0x76] sm:$0x3] }
  0x98   :  { %v833_v41 = vadd.f32 %v832_v27, %v831_v15  ;;  %v845_v46 = vadd.f32 %v844_v28, %v843_v16  ;;  %v851_v47 = vrot.slane %v850_v56, 2  ;;  %v405_v36 = vadd.f32 %v341_v19, %v213_v13  ;;  %v351_v63 = vld [vmem:[#allocation2 + $0x78] sm:$0x3]  ;;  %v224_v4 = vld [vmem:[#allocation4 + $0x7a] sm:$0x3] }
  0x99   :  { %v840_v37 = vadd.f32 %v839_v38, %v838_v23  ;;  %v1271_v54 = vsel %vm1259_vm3, %v826_v34, %v1270_v39  ;;  %v406_v62 = vadd.f32 %v342_v20, %v214_v51  ;;  %v407_v55 = vadd.f32 %v343_v24, %v215_v18  ;;  %468 = vst [vmem:[#allocation2 + $0x62] sm:$0x3] %v404_v40  ;;  %v225_v3 = vld [vmem:[#allocation4 + $0x7c] sm:$0x3]  ;;  %v226_v5 = vld [vmem:[#allocation4 + $0x7e] sm:$0x3] }
  0x9a   :  { %v846_v42 = vrot.slane %v845_v46, 1  ;;  %v852_v1 = vadd.f32 %v851_v47, %v850_v56  ;;  %v1272_v2 = vsel %vm1261_vm4, %v833_v41, %v1271_v54  ;;  %v408_v43 = vadd.f32 %v344_v25, %v216_v52  ;;  %469 = vst [vmem:[#allocation2 + $0x64] sm:$0x3] %v405_v36  ;;  %v352_v0 = vld [vmem:[#allocation2 + $0x7a] sm:$0x3] }
  0x9b   :  { %v353_v6 = vld [vmem:[#allocation2 + $0x7c] sm:$0x3]  ;;  %v354_v44 = vld [vmem:[#allocation2 + $0x7e] sm:$0x3]  ;;  %v1273_v8 = vsel %vm1263_vm5, %v840_v37, %v1272_v2  ;;  %v409_v7 = vadd.f32 %v345_v32, %v217_v30  ;;  %v410_v9 = vadd.f32 %v346_v33, %v218_v31  ;;  %470 = vst [vmem:[#allocation2 + $0x66] sm:$0x3] %v406_v62  ;;  %v411_v50 = vadd.f32 %v347_v57, %v219_v35 }
  0x9c   :  { %v187_v10 = vld [vmem:[#allocation4 + $0x30] sm:$0x3]  ;;  %v188_v45 = vld [vmem:[#allocation4 + $0x32] sm:$0x3]  ;;  %v847_v13 = vadd.f32 %v846_v42, %v845_v46  ;;  %v853_v14 = vrot.slane %v852_v1, 1  ;;  %v412_v51 = vadd.f32 %v348_v49, %v220_v48  ;;  %v413_v18 = vadd.f32 %v349_v53, %v221_v61 }
  0x9d   :  { %v315_v11 = vld [vmem:[#allocation2 + $0x30] sm:$0x3]  ;;  %v316_v12 = vld [vmem:[#allocation2 + $0x32] sm:$0x3]  ;;  %471 = vst [vmem:[#allocation2 + $0x68] sm:$0x3] %v407_v55  ;;  %v414_v24 = vadd.f32 %v350_v60, %v222_v58  ;;  %v415_v25 = vadd.f32 %v351_v63, %v223_v59  ;;  %v416_v29 = vadd.f32 %v352_v0, %v224_v4  ;;  %v417_v30 = vadd.f32 %v353_v6, %v225_v3 }
  0x9e   :  { %v189_v15 = vld [vmem:[#allocation4 + $0x34] sm:$0x3]  ;;  %v190_v16 = vld [vmem:[#allocation4 + $0x36] sm:$0x3]  ;;  %472 = vst [vmem:[#allocation2 + $0x6a] sm:$0x3] %v408_v43  ;;  %v854_v22 = vadd.f32 %v853_v14, %v852_v1  ;;  %v1274_v23 = vsel %vm1265_vm6, %v847_v13, %v1273_v8  ;;  %v418_v31 = vadd.f32 %v354_v44, %v226_v5  ;;  %v379_v35 = vadd.f32 %v315_v11, %v187_v10 }
  0x9f   :  { %v317_v17 = vld [vmem:[#allocation2 + $0x34] sm:$0x3]  ;;  %v191_v19 = vld [vmem:[#allocation4 + $0x38] sm:$0x3]  ;;  %v318_v20 = vld [vmem:[#allocation2 + $0x36] sm:$0x3]  ;;  %v2499_v57 = vadd.f32 %v316_v12, %v188_v45 }
  0xa0   :  { %v319_v21 = vld [vmem:[#allocation2 + $0x38] sm:$0x3]  ;;  %473 = vst [vmem:[#allocation2 + $0x6c] sm:$0x3] %v409_v7  ;;  %v726_v52 = vld [vmem:[#allocation2 + $0x60] sm:$0x3]  ;;  %v1275_v33 = vsel %vm1267_vm7, %v854_v22, %v1274_v23  ;;  %v2502_v47 = vadd.f32 %v317_v17, %v189_v15  ;;  %v2504_v36 = vadd.f32 %v318_v20, %v190_v16 }
  0xa1   :  { %v192_v26 = vld [vmem:[#allocation4 + $0x3a] sm:$0x3]  ;;  %v193_v27 = vld [vmem:[#allocation4 + $0x3c] sm:$0x3]  ;;  %474 = vst [vmem:[#allocation2 + $0x6e] sm:$0x3] %v410_v9  ;;  %1328 = vadd.xlane.f32.xlu0 %v1275_v33  ;;  %v2507_v37 = vadd.f32 %v319_v21, %v191_v19 }
  0xa2   :  { %v320_v28 = vld [vmem:[#allocation2 + $0x3a] sm:$0x3]  ;;  %v1079_v56 = vsel %vm742_vm0, %v726_v52, 0.0  ;;  %v321_v32 = vld [vmem:[#allocation2 + $0x3c] sm:$0x3] }
  0xa3   :  { %v727_v34 = vld [vmem:[#allocation2 + $0x62] sm:$0x3]  ;;  %v1080_v38 = vrot.slane %v1079_v56, 4  ;;  %475 = vst [vmem:[#allocation2 + $0x70] sm:$0x3] %v411_v50  ;;  %v2510_v58 = vadd.f32 %v320_v28, %v192_v26  ;;  %v2512_v59 = vadd.f32 %v321_v32, %v193_v27 }
  0xa4   :  { %v194_v39 = vld [vmem:[#allocation4 + $0x3e] sm:$0x3]  ;;  %v728_v41 = vld [vmem:[#allocation2 + $0x64] sm:$0x3]  ;;  %v1086_v46 = vsel %vm742_vm0, %v727_v34, 0.0 }
  0xa5   :  { %v322_v40 = vld [vmem:[#allocation2 + $0x3e] sm:$0x3]  ;;  %476 = vst [vmem:[#allocation2 + $0x72] sm:$0x3] %v412_v51  ;;  %v729_v48 = vld [vmem:[#allocation2 + $0x66] sm:$0x3]  ;;  %v1081_v61 = vadd.f32 %v1080_v38, %v1079_v56 }
  0xa6   :  { %v1087_v49 = vrot.slane %v1086_v46, 4  ;;  %v1093_v53 = vsel %vm742_vm0, %v728_v41, 0.0  ;;  %477 = vst [vmem:[#allocation2 + $0x74] sm:$0x3] %v413_v18  ;;  %v730_v54 = vld [vmem:[#allocation2 + $0x68] sm:$0x3]  ;;  %v2516_v0 = vadd.f32 %v322_v40, %v194_v39 }
  0xa7   :  { %v1094_v62 = vrot.slane %v1093_v53, 4  ;;  %v1100_v55 = vsel %vm742_vm0, %v729_v48, 0.0  ;;  %478 = vst [vmem:[#allocation2 + $0x76] sm:$0x3] %v414_v24  ;;  %v731_v60 = vld [vmem:[#allocation2 + $0x6a] sm:$0x3] }
  0xa8   :  { %v1082_v63 = vrot.slane %v1081_v61, 2  ;;  %v1088_v42 = vadd.f32 %v1087_v49, %v1086_v46  ;;  %v1101_v1 = vrot.slane %v1100_v55, 4  ;;  %v1107_v2 = vsel %vm742_vm0, %v730_v54, 0.0  ;;  %v732_v43 = vld [vmem:[#allocation2 + $0x6c] sm:$0x3] }
  0xa9   :  { %v1095_v4 = vadd.f32 %v1094_v62, %v1093_v53  ;;  %v1108_v3 = vrot.slane %v1107_v2, 4  ;;  %v1114_v5 = vsel %vm742_vm0, %v731_v60, 0.0  ;;  %479 = vst [vmem:[#allocation2 + $0x78] sm:$0x3] %v415_v25  ;;  %v733_v6 = vld [vmem:[#allocation2 + $0x6e] sm:$0x3] }
  0xaa   :  { %v1083_v44 = vadd.f32 %v1082_v63, %v1081_v61  ;;  %v1089_v8 = vrot.slane %v1088_v42, 2  ;;  %v1102_v7 = vadd.f32 %v1101_v1, %v1100_v55  ;;  %v1115_v9 = vrot.slane %v1114_v5, 4  ;;  %480 = vst [vmem:[#allocation2 + $0x7a] sm:$0x3] %v416_v29  ;;  %v734_v19 = vld [vmem:[#allocation2 + $0x70] sm:$0x3] }
  0xab   :  { %v1096_v10 = vrot.slane %v1095_v4, 2  ;;  %v1109_v45 = vadd.f32 %v1108_v3, %v1107_v2  ;;  %v1121_v11 = vsel %vm742_vm0, %v732_v43, 0.0  ;;  %v1128_v12 = vsel %vm742_vm0, %v733_v6, 0.0  ;;  %481 = vst [vmem:[#allocation2 + $0x7c] sm:$0x3] %v417_v30 }
  0xac   :  { %v1084_v13 = vrot.slane %v1083_v44, 1  ;;  %v1090_v14 = vadd.f32 %v1089_v8, %v1088_v42  ;;  %v1103_v50 = vrot.slane %v1102_v7, 2  ;;  %v1116_v15 = vadd.f32 %v1115_v9, %v1114_v5  ;;  %482 = vst [vmem:[#allocation2 + $0x7e] sm:$0x3] %v418_v31  ;;  %v735_v34 = vld [vmem:[#allocation2 + $0x72] sm:$0x3] }
  0xad   :  { %v1097_v16 = vadd.f32 %v1096_v10, %v1095_v4  ;;  %v1110_v17 = vrot.slane %v1109_v45, 2  ;;  %v1122_v51 = vrot.slane %v1121_v11, 4  ;;  %v1129_v18 = vrot.slane %v1128_v12, 4  ;;  %443 = vst [vmem:[#allocation2 + $0x30] sm:$0x3] %v379_v35 }
  0xae   :  { %v1085_v20 = vadd.f32 %v1084_v13, %v1083_v44  ;;  %v1091_v21 = vrot.slane %v1090_v14, 1  ;;  %v1104_v22 = vadd.f32 %v1103_v50, %v1102_v7  ;;  %v1117_v23 = vrot.slane %v1116_v15, 2  ;;  %444 = vst [vmem:[#allocation2 + $0x32] sm:$0x3] %v2499_v57  ;;  %v736_v41 = vld [vmem:[#allocation2 + $0x74] sm:$0x3] }
  0xaf   :  { %v1098_v52 = vrot.slane %v1097_v16, 1  ;;  %v1111_v24 = vadd.f32 %v1110_v17, %v1109_v45  ;;  %v1123_v25 = vadd.f32 %v1122_v51, %v1121_v11  ;;  %v1130_v26 = vadd.f32 %v1129_v18, %v1128_v12  ;;  %445 = vst [vmem:[#allocation2 + $0x34] sm:$0x3] %v2502_v47  ;;  %v737_v53 = vld [vmem:[#allocation2 + $0x76] sm:$0x3] }
  0xb0   :  { %v1092_v27 = vadd.f32 %v1091_v21, %v1090_v14  ;;  %v1105_v28 = vrot.slane %v1104_v22, 1  ;;  %v1118_v56 = vadd.f32 %v1117_v23, %v1116_v15  ;;  %v1135_v29 = vsel %vm742_vm0, %v734_v19, 0.0  ;;  %v738_v57 = vld [vmem:[#allocation2 + $0x78] sm:$0x3]  ;;  %446 = vst [vmem:[#allocation2 + $0x36] sm:$0x3] %v2504_v36 }
  0xb1   :  { %v1099_v30 = vadd.f32 %v1098_v52, %v1097_v16  ;;  %v1112_v31 = vrot.slane %v1111_v24, 1  ;;  %v1124_v32 = vrot.slane %v1123_v25, 2  ;;  %v1131_v33 = vrot.slane %v1130_v26, 2  ;;  %v739_v55 = vld [vmem:[#allocation2 + $0x7a] sm:$0x3] }
  0xb2   :  { %v1106_v38 = vadd.f32 %v1105_v28, %v1104_v22  ;;  %v1119_v39 = vrot.slane %v1118_v56, 1  ;;  %v1304_v40 = vsel %vm1255_vm1, %v1092_v27, %v1085_v20  ;;  %v1136_v46 = vrot.slane %v1135_v29, 4  ;;  %447 = vst [vmem:[#allocation2 + $0x38] sm:$0x3] %v2507_v37  ;;  %v740_v8 = vld [vmem:[#allocation2 + $0x7c] sm:$0x3] }
  0xb3   :  { %v1113_v35 = vadd.f32 %v1112_v31, %v1111_v24  ;;  %v1125_v48 = vadd.f32 %v1124_v32, %v1123_v25  ;;  %v1132_v61 = vadd.f32 %v1131_v33, %v1130_v26  ;;  %v1305_v49 = vsel %vm1257_vm2, %v1099_v30, %v1304_v40  ;;  %448 = vst [vmem:[#allocation2 + $0x3a] sm:$0x3] %v2510_v58  ;;  %v741_v50 = vld [vmem:[#allocation2 + $0x7e] sm:$0x3] }
  0xb4   :  { %v1120_v54 = vadd.f32 %v1119_v39, %v1118_v56  ;;  %v1306_v62 = vsel %vm1259_vm3, %v1106_v38, %v1305_v49  ;;  %v1137_v60 = vadd.f32 %v1136_v46, %v1135_v29  ;;  %v1142_v63 = vsel %vm742_vm0, %v735_v34, 0.0  ;;  %449 = vst [vmem:[#allocation2 + $0x3c] sm:$0x3] %v2512_v59  ;;  %v702_v52 = vld [vmem:[#allocation2 + $0x30] sm:$0x3] }
  0xb5   :  { %v1126_v42 = vrot.slane %v1125_v48, 1  ;;  %v1133_v47 = vrot.slane %v1132_v61, 1  ;;  %v1307_v1 = vsel %vm1261_vm4, %v1113_v35, %v1306_v62  ;;  %v1143_v2 = vrot.slane %v1142_v63, 4  ;;  %450 = vst [vmem:[#allocation2 + $0x3e] sm:$0x3] %v2516_v0 }
  0xb6   :  { %v1308_v43 = vsel %vm1263_vm5, %v1120_v54, %v1307_v1  ;;  %v1138_v4 = vrot.slane %v1137_v60, 2  ;;  %v1149_v36 = vsel %vm742_vm0, %v736_v41, 0.0  ;;  %v1156_v3 = vsel %vm742_vm0, %v737_v53, 0.0  ;;  %v703_v46 = vld [vmem:[#allocation2 + $0x32] sm:$0x3] }
  0xb7   :  { %v1127_v5 = vadd.f32 %v1126_v42, %v1125_v48  ;;  %v1134_v6 = vadd.f32 %v1133_v47, %v1132_v61  ;;  %v1144_v44 = vadd.f32 %v1143_v2, %v1142_v63  ;;  %v1150_v37 = vrot.slane %v1149_v36, 4  ;;  %v705_v42 = vld [vmem:[#allocation2 + $0x36] sm:$0x3] }
  0xb8   :  { %v1139_v7 = vadd.f32 %v1138_v4, %v1137_v60  ;;  %v1157_v9 = vrot.slane %v1156_v3, 4  ;;  %v1163_v58 = vsel %vm742_vm0, %v738_v57, 0.0  ;;  %v1170_v10 = vsel %vm742_vm0, %v739_v55, 0.0  ;;  %v704_v55 = vld [vmem:[#allocation2 + $0x34] sm:$0x3] }
  0xb9   :  { %v1309_v45 = vsel %vm1265_vm6, %v1127_v5, %v1308_v43  ;;  %v1145_v11 = vrot.slane %v1144_v44, 2  ;;  %v1151_v12 = vadd.f32 %v1150_v37, %v1149_v36  ;;  %v1164_v13 = vrot.slane %v1163_v58, 4 }
  0xba   :  { %v2292_v14 = vmov -inf   ;;  %v1310_v59 = vsel %vm1267_vm7, %v1134_v6, %v1309_v45  ;;  %v1140_v15 = vrot.slane %v1139_v7, 1  ;;  %v1158_v0 = vadd.f32 %v1157_v9, %v1156_v3  ;;  %v706_v3 = vld [vmem:[#allocation2 + $0x38] sm:$0x3] }
  0xbb   :  { %99 = vst [vmem:[#allocation3] sm:$0x3] %v2292_v14  ;;  %v1171_v16 = vrot.slane %v1170_v10, 4  ;;  %1338 = vadd.xlane.f32.xlu2 %v1310_v59  ;;  %v1146_v17 = vadd.f32 %v1145_v11, %v1144_v44  ;;  %v1152_v51 = vrot.slane %v1151_v12, 2  ;;  %v1165_v18 = vadd.f32 %v1164_v13, %v1163_v58  ;;  %v707_v58 = vld [vmem:[#allocation2 + $0x3a] sm:$0x3] }
  0xbc   :  { %100 = vst [vmem:[#allocation3 + $0x2] sm:$0x3] %v2292_v14  ;;  %v1177_v19 = vsel %vm742_vm0, %v740_v8, 0.0  ;;  %v1141_v20 = vadd.f32 %v1140_v15, %v1139_v7  ;;  %v1159_v21 = vrot.slane %v1158_v0, 2  ;;  %v1184_v27 = vsel %vm742_vm0, %v741_v50, 0.0 }
  0xbd   :  { %101 = vst [vmem:[#allocation3 + $0x4] sm:$0x3] %v2292_v14  ;;  %v1172_v22 = vadd.f32 %v1171_v16, %v1170_v10  ;;  %v1178_v23 = vrot.slane %v1177_v19, 4  ;;  %v1147_v24 = vrot.slane %v1146_v17, 1  ;;  %v1153_v25 = vadd.f32 %v1152_v51, %v1151_v12  ;;  %v708_v45 = vld [vmem:[#allocation2 + $0x3c] sm:$0x3] }
  0xbe   :  { %102 = vst [vmem:[#allocation3 + $0x6] sm:$0x3] %v2292_v14  ;;  %v1166_v26 = vrot.slane %v1165_v18, 2  ;;  %v1160_v28 = vadd.f32 %v1159_v21, %v1158_v0  ;;  %v1185_v30 = vrot.slane %v1184_v27, 4  ;;  %v911_v34 = vsel %vm742_vm0, %v702_v52, 0.0 }
  0xbf   :  { %v1173_v56 = vrot.slane %v1172_v22, 2  ;;  %v1179_v29 = vadd.f32 %v1178_v23, %v1177_v19  ;;  %103 = vst [vmem:[#allocation3 + $0x8] sm:$0x3] %v2292_v14  ;;  %v1148_v31 = vadd.f32 %v1147_v24, %v1146_v17  ;;  %v1154_v32 = vrot.slane %v1153_v25, 1  ;;  %v709_v0 = vld [vmem:[#allocation2 + $0x3e] sm:$0x3] }
  0xc0   :  { %v1167_v33 = vadd.f32 %v1166_v26, %v1165_v18  ;;  %104 = vst [vmem:[#allocation3 + $0xa] sm:$0x3] %v2292_v14  ;;  %v1161_v38 = vrot.slane %v1160_v28, 1  ;;  %v1186_v41 = vadd.f32 %v1185_v30, %v1184_v27  ;;  %v912_v49 = vrot.slane %v911_v34, 4 }
  0xc1   :  { %v1174_v39 = vadd.f32 %v1173_v56, %v1172_v22  ;;  %v1180_v40 = vrot.slane %v1179_v29, 2  ;;  %105 = vst [vmem:[#allocation3 + $0xc] sm:$0x3] %v2292_v14  ;;  %v1155_v35 = vadd.f32 %v1154_v32, %v1153_v25  ;;  %v1311_v61 = vsel %vm1255_vm1, %v1148_v31, %v1141_v20 }
  0xc2   :  { %v1168_v48 = vrot.slane %v1167_v33, 1  ;;  %106 = vst [vmem:[#allocation3 + $0xe] sm:$0x3] %v2292_v14  ;;  %v1162_v53 = vadd.f32 %v1161_v38, %v1160_v28  ;;  %v1187_v62 = vrot.slane %v1186_v41, 2  ;;  %v913_v47 = vadd.f32 %v912_v49, %v911_v34  ;;  %v483_v24 = vld [vmem:[#allocation3] sm:$0x3] }
  0xc3   :  { %v1175_v57 = vrot.slane %v1174_v39, 1  ;;  %v1181_v54 = vadd.f32 %v1180_v40, %v1179_v29  ;;  %107 = vst [vmem:[#allocation3 + $0x10] sm:$0x3] %v2292_v14  ;;  %v1312_v63 = vsel %vm1257_vm2, %v1155_v35, %v1311_v61  ;;  %v918_v1 = vsel %vm742_vm0, %v703_v46, 0.0  ;;  %v484_v56 = vld [vmem:[#allocation3 + $0x2] sm:$0x3] }
  0xc4   :  { %v1169_v60 = vadd.f32 %v1168_v48, %v1167_v33  ;;  %108 = vst [vmem:[#allocation3 + $0x12] sm:$0x3] %v2292_v14  ;;  %v1188_v4 = vadd.f32 %v1187_v62, %v1186_v41  ;;  %v1313_v36 = vsel %vm1259_vm3, %v1162_v53, %v1312_v63  ;;  %v914_v6 = vrot.slane %v913_v47, 2  ;;  %v485_v33 = vld [vmem:[#allocation3 + $0x4] sm:$0x3] }
  0xc5   :  { %v1176_v2 = vadd.f32 %v1175_v57, %v1174_v39  ;;  %v1182_v43 = vrot.slane %v1181_v54, 1  ;;  %109 = vst [vmem:[#allocation3 + $0x14] sm:$0x3] %v2292_v14  ;;  %v919_v44 = vrot.slane %v918_v1, 4  ;;  %v925_v37 = vsel %vm742_vm0, %v704_v55, 0.0 }
  0xc6   :  { %v1314_v5 = vsel %vm1261_vm4, %v1169_v60, %v1313_v36  ;;  %v1189_v7 = vrot.slane %v1188_v4, 1  ;;  %v926_v10 = vrot.slane %v925_v37, 4  ;;  %110 = vst [vmem:[#allocation3 + $0x16] sm:$0x3] %v2292_v14  ;;  %v915_v11 = vadd.f32 %v914_v6, %v913_v47  ;;  %v2172_v40 = vld [vmem:[#allocation4] sm:$0x3] }
  0xc7   :  { %v1183_v8 = vadd.f32 %v1182_v43, %v1181_v54  ;;  %v1315_v9 = vsel %vm1263_vm5, %v1176_v2, %v1314_v5  ;;  %v920_v12 = vadd.f32 %v919_v44, %v918_v1  ;;  %v932_v13 = vsel %vm742_vm0, %v705_v42, 0.0  ;;  %111 = vst [vmem:[#allocation3 + $0x18] sm:$0x3] %v2292_v14  ;;  %v486_v49 = vld [vmem:[#allocation3 + $0x6] sm:$0x3] }
  0xc8   :  { %v939_v59 = vsel %vm742_vm0, %v706_v3, 0.0  ;;  %v1190_v50 = vadd.f32 %v1189_v7, %v1188_v4  ;;  %v927_v16 = vadd.f32 %v926_v10, %v925_v37  ;;  %v933_v17 = vrot.slane %v932_v13, 4  ;;  %112 = vst [vmem:[#allocation3 + $0x1a] sm:$0x3] %v2292_v14  ;;  %v487_v62 = vld [vmem:[#allocation3 + $0x8] sm:$0x3] }
  0xc9   :  { %v1316_v15 = vsel %vm1265_vm6, %v1183_v8, %v1315_v9  ;;  %v916_v51 = vrot.slane %v915_v11, 1  ;;  %v921_v18 = vrot.slane %v920_v12, 2  ;;  %v940_v19 = vrot.slane %v939_v59, 4  ;;  %113 = vst [vmem:[#allocation3 + $0x1c] sm:$0x3] %v2292_v14 }
  0xca   :  { %v946_v20 = vsel %vm742_vm0, %v707_v58, 0.0  ;;  %v1317_v21 = vsel %vm1267_vm7, %v1190_v50, %v1316_v15  ;;  %v928_v22 = vrot.slane %v927_v16, 2  ;;  %v934_v23 = vadd.f32 %v933_v17, %v932_v13  ;;  %114 = vst [vmem:[#allocation3 + $0x1e] sm:$0x3] %v2292_v14  ;;  %v2173_v55 = vld [vmem:[#allocation4 + $0x2] sm:$0x3] }
  0xcb   :  { %v947_v52 = vrot.slane %v946_v20, 4  ;;  %1340 = vadd.xlane.f32.xlu1 %v1317_v21  ;;  %v917_v25 = vadd.f32 %v916_v51, %v915_v11  ;;  %v922_v26 = vadd.f32 %v921_v18, %v920_v12  ;;  %v941_v27 = vadd.f32 %v940_v19, %v939_v59  ;;  %115 = vst [vmem:[#allocation3 + $0x20] sm:$0x3] %v2292_v14  ;;  %v488_v2 = vld [vmem:[#allocation3 + $0xa] sm:$0x3] }
  0xcc   :  { %v953_v28 = vsel %vm742_vm0, %v708_v45, 0.0  ;;  %v929_v29 = vadd.f32 %v928_v22, %v927_v16  ;;  %v935_v30 = vrot.slane %v934_v23, 2  ;;  %116 = vst [vmem:[#allocation3 + $0x22] sm:$0x3] %v2292_v14  ;;  %v960_v39 = vsel %vm742_vm0, %v709_v0, 0.0 }
  0xcd   :  { %v948_v31 = vadd.f32 %v947_v52, %v946_v20  ;;  %v954_v32 = vrot.slane %v953_v28, 4  ;;  %v923_v34 = vrot.slane %v922_v26, 1  ;;  %v942_v38 = vrot.slane %v941_v27, 2  ;;  %117 = vst [vmem:[#allocation3 + $0x24] sm:$0x3] %v2292_v14 }
  0xce   :  { %v547_v41 = vmax.f32 %v483_v24, %v2172_v40  ;;  %v930_v46 = vrot.slane %v929_v29, 1  ;;  %v936_v35 = vadd.f32 %v935_v30, %v934_v23  ;;  %118 = vst [vmem:[#allocation3 + $0x26] sm:$0x3] %v2292_v14  ;;  %v961_v54 = vrot.slane %v960_v39, 4  ;;  %v489_v3 = vld [vmem:[#allocation3 + $0xc] sm:$0x3] }
  0xcf   :  { %v949_v48 = vrot.slane %v948_v31, 2  ;;  %v955_v61 = vadd.f32 %v954_v32, %v953_v28  ;;  %v924_v53 = vadd.f32 %v923_v34, %v922_v26  ;;  %v943_v57 = vadd.f32 %v942_v38, %v941_v27  ;;  %119 = vst [vmem:[#allocation3 + $0x28] sm:$0x3] %v2292_v14  ;;  %v2174_v5 = vld [vmem:[#allocation4 + $0x4] sm:$0x3] }
  0xd0   :  { %v548_v60 = vmax.f32 %v484_v56, %v2173_v55  ;;  %611 = vst [vmem:[#allocation3] sm:$0x3] %v547_v41  ;;  %v931_v63 = vadd.f32 %v930_v46, %v929_v29  ;;  %v937_v42 = vrot.slane %v936_v35, 1  ;;  %v962_v4 = vadd.f32 %v961_v54, %v960_v39  ;;  %v490_v9 = vld [vmem:[#allocation3 + $0xe] sm:$0x3] }
  0xd1   :  { %v950_v47 = vadd.f32 %v949_v48, %v948_v31  ;;  %v956_v1 = vrot.slane %v955_v61, 2  ;;  %v944_v43 = vrot.slane %v943_v57, 1  ;;  %v1283_v36 = vsel %vm1255_vm1, %v924_v53, %v917_v25  ;;  %120 = vst [vmem:[#allocation3 + $0x2a] sm:$0x3] %v2292_v14  ;;  %v2175_v45 = vld [vmem:[#allocation4 + $0x6] sm:$0x3] }
  0xd2   :  { %v549_v6 = vmax.f32 %v485_v33, %v2174_v5  ;;  %612 = vst [vmem:[#allocation3 + $0x2] sm:$0x3] %v548_v60  ;;  %v938_v44 = vadd.f32 %v937_v42, %v936_v35  ;;  %v1284_v7 = vsel %vm1257_vm2, %v931_v63, %v1283_v36  ;;  %v963_v10 = vrot.slane %v962_v4, 2  ;;  %v2176_v12 = vld [vmem:[#allocation4 + $0x8] sm:$0x3] }
  0xd3   :  { %v951_v37 = vrot.slane %v950_v47, 1  ;;  %v957_v8 = vadd.f32 %v956_v1, %v955_v61  ;;  %v945_v58 = vadd.f32 %v944_v43, %v943_v57  ;;  %v550_v11 = vmax.f32 %v486_v49, %v2175_v45  ;;  %v2177_v0 = vld [vmem:[#allocation4 + $0xa] sm:$0x3]  ;;  %121 = vst [vmem:[#allocation3 + $0x2c] sm:$0x3] %v2292_v14 }
  0xd4   :  { %v551_v13 = vmax.f32 %v487_v62, %v2176_v12  ;;  %613 = vst [vmem:[#allocation3 + $0x4] sm:$0x3] %v549_v6  ;;  %v1285_v15 = vsel %vm1259_vm3, %v938_v44, %v1284_v7  ;;  %v552_v16 = vmax.f32 %v488_v2, %v2177_v0  ;;  %v964_v17 = vadd.f32 %v963_v10, %v962_v4  ;;  %v2178_v18 = vld [vmem:[#allocation4 + $0xc] sm:$0x3]  ;;  %v2179_v20 = vld [vmem:[#allocation4 + $0xe] sm:$0x3] }
  0xd5   :  { %v952_v59 = vadd.f32 %v951_v37, %v950_v47  ;;  %v958_v50 = vrot.slane %v957_v8, 1  ;;  %v1286_v51 = vsel %vm1261_vm4, %v945_v58, %v1285_v15  ;;  %v553_v19 = vmax.f32 %v489_v3, %v2178_v18  ;;  %614 = vst [vmem:[#allocation3 + $0x6] sm:$0x3] %v550_v11 }
  0xd6   :  { %v554_v21 = vmax.f32 %v490_v9, %v2179_v20  ;;  %615 = vst [vmem:[#allocation3 + $0x8] sm:$0x3] %v551_v13  ;;  %v965_v24 = vrot.slane %v964_v17, 1 }
  0xd7   :  { %v959_v22 = vadd.f32 %v958_v50, %v957_v8  ;;  %v1287_v23 = vsel %vm1263_vm5, %v952_v59, %v1286_v51  ;;  %v1342_v52 = vld [vmem:[#allocation3] sm:$0x3]  ;;  %616 = vst [vmem:[#allocation3 + $0xa] sm:$0x3] %v552_v16 }
  0xd8   :  { %v1406_v25 = vsel %vm742_vm0, %v1342_v52, -inf  ;;  %617 = vst [vmem:[#allocation3 + $0xc] sm:$0x3] %v553_v19  ;;  %v966_v56 = vadd.f32 %v965_v24, %v964_v17 }
  0xd9   :  { %v1288_v26 = vsel %vm1265_vm6, %v959_v22, %v1287_v23  ;;  %v1343_v27 = vld [vmem:[#allocation3 + $0x2] sm:$0x3]  ;;  %v1407_v28 = vrot.slane %v1406_v25, 4  ;;  %618 = vst [vmem:[#allocation3 + $0xe] sm:$0x3] %v554_v21 }
  0xda   :  { %v1413_v29 = vsel %vm742_vm0, %v1343_v27, -inf  ;;  %122 = vst [vmem:[#allocation3 + $0x2e] sm:$0x3] %v2292_v14  ;;  %v1289_v33 = vsel %vm1267_vm7, %v966_v56, %v1288_v26 }
  0xdb   :  { %v1344_v30 = vld [vmem:[#allocation3 + $0x4] sm:$0x3]  ;;  %v1408_v31 = vmax.f32 %v1406_v25, %v1407_v28  ;;  %v1414_v32 = vrot.slane %v1413_v29, 4  ;;  %123 = vst [vmem:[#allocation3 + $0x30] sm:$0x3] %v2292_v14  ;;  %1332 = vadd.xlane.f32.xlu0 %v1289_v33 }
  0xdc   :  { %v1420_v34 = vsel %vm742_vm0, %v1344_v30, -inf  ;;  %v1345_v38 = vld [vmem:[#allocation3 + $0x6] sm:$0x3]  ;;  %124 = vst [vmem:[#allocation3 + $0x32] sm:$0x3] %v2292_v14 }
  0xdd   :  { %v1409_v39 = vrot.slane %v1408_v31, 2  ;;  %v1415_v40 = vmax.f32 %v1413_v29, %v1414_v32  ;;  %v1421_v41 = vrot.slane %v1420_v34, 4  ;;  %v1346_v46 = vld [vmem:[#allocation3 + $0x8] sm:$0x3]  ;;  %v1427_v35 = vsel %vm742_vm0, %v1345_v38, -inf }
  0xde   :  { %125 = vst [vmem:[#allocation3 + $0x34] sm:$0x3] %v2292_v14  ;;  %v1347_v48 = vld [vmem:[#allocation3 + $0xa] sm:$0x3]  ;;  %v1428_v57 = vrot.slane %v1427_v35, 4  ;;  %v1434_v62 = vsel %vm742_vm0, %v1346_v46, -inf }
  0xdf   :  { %v1410_v61 = vmax.f32 %v1408_v31, %v1409_v39  ;;  %v1416_v49 = vrot.slane %v1415_v40, 2  ;;  %v1422_v53 = vmax.f32 %v1420_v34, %v1421_v41  ;;  %126 = vst [vmem:[#allocation3 + $0x36] sm:$0x3] %v2292_v14  ;;  %v1348_v54 = vld [vmem:[#allocation3 + $0xc] sm:$0x3]  ;;  %v1441_v55 = vsel %vm742_vm0, %v1347_v48, -inf }
  0xe0   :  { %127 = vst [vmem:[#allocation3 + $0x38] sm:$0x3] %v2292_v14  ;;  %v1349_v60 = vld [vmem:[#allocation3 + $0xe] sm:$0x3]  ;;  %v1429_v1 = vmax.f32 %v1427_v35, %v1428_v57  ;;  %v1435_v2 = vrot.slane %v1434_v62, 4  ;;  %v1442_v43 = vrot.slane %v1441_v55, 4 }
  0xe1   :  { %v1411_v63 = vrot.slane %v1410_v61, 1  ;;  %v1417_v42 = vmax.f32 %v1415_v40, %v1416_v49  ;;  %v1423_v47 = vrot.slane %v1422_v53, 2  ;;  %128 = vst [vmem:[#allocation3 + $0x3a] sm:$0x3] %v2292_v14  ;;  %v1448_v4 = vsel %vm742_vm0, %v1348_v54, -inf }
  0xe2   :  { %v1455_v36 = vsel %vm742_vm0, %v1349_v60, -inf  ;;  %129 = vst [vmem:[#allocation3 + $0x3c] sm:$0x3] %v2292_v14  ;;  %v1430_v44 = vrot.slane %v1429_v1, 2  ;;  %v1436_v37 = vmax.f32 %v1434_v62, %v1435_v2  ;;  %v1443_v8 = vmax.f32 %v1441_v55, %v1442_v43  ;;  %v2180_v41 = vld [vmem:[#allocation4 + $0x40] sm:$0x3] }
  0xe3   :  { %v1412_v3 = vmax.f32 %v1410_v61, %v1411_v63  ;;  %v1418_v5 = vrot.slane %v1417_v42, 1  ;;  %v1424_v6 = vmax.f32 %v1422_v53, %v1423_v47  ;;  %130 = vst [vmem:[#allocation3 + $0x3e] sm:$0x3] %v2292_v14  ;;  %v1449_v7 = vrot.slane %v1448_v4, 4  ;;  %v2181_v48 = vld [vmem:[#allocation4 + $0x42] sm:$0x3] }
  0xe4   :  { %v1456_v9 = vrot.slane %v1455_v36, 4  ;;  %131 = vst [vmem:[#allocation3 + $0x40] sm:$0x3] %v2292_v14  ;;  %v1431_v45 = vmax.f32 %v1429_v1, %v1430_v44  ;;  %v1437_v11 = vrot.slane %v1436_v37, 2  ;;  %v1444_v12 = vrot.slane %v1443_v8, 2 }
  0xe5   :  { %v1419_v58 = vmax.f32 %v1417_v42, %v1418_v5  ;;  %v1425_v10 = vrot.slane %v1424_v6, 1  ;;  %132 = vst [vmem:[#allocation3 + $0x42] sm:$0x3] %v2292_v14  ;;  %v1450_v13 = vmax.f32 %v1448_v4, %v1449_v7  ;;  %v2182_v53 = vld [vmem:[#allocation4 + $0x44] sm:$0x3] }
  0xe6   :  { %v1457_v59 = vmax.f32 %v1455_v36, %v1456_v9  ;;  %133 = vst [vmem:[#allocation3 + $0x44] sm:$0x3] %v2292_v14  ;;  %v1432_v15 = vrot.slane %v1431_v45, 1  ;;  %v1438_v16 = vmax.f32 %v1436_v37, %v1437_v11  ;;  %v1445_v17 = vmax.f32 %v1443_v8, %v1444_v12  ;;  %v2183_v62 = vld [vmem:[#allocation4 + $0x46] sm:$0x3] }
  0xe7   :  { %v1426_v50 = vmax.f32 %v1424_v6, %v1425_v10  ;;  %v1918_v0 = vsel %vm1255_vm1, %v1419_v58, %v1412_v3  ;;  %134 = vst [vmem:[#allocation3 + $0x46] sm:$0x3] %v2292_v14  ;;  %v1451_v51 = vrot.slane %v1450_v13, 2  ;;  %v2184_v63 = vld [vmem:[#allocation4 + $0x48] sm:$0x3] }
  0xe8   :  { %v1458_v18 = vrot.slane %v1457_v59, 2  ;;  %135 = vst [vmem:[#allocation3 + $0x48] sm:$0x3] %v2292_v14  ;;  %v1433_v19 = vmax.f32 %v1431_v45, %v1432_v15  ;;  %v1439_v21 = vrot.slane %v1438_v16, 1  ;;  %v1446_v22 = vrot.slane %v1445_v17, 1 }
  0xe9   :  { %v1919_v20 = vsel %vm1257_vm2, %v1426_v50, %v1918_v0  ;;  %136 = vst [vmem:[#allocation3 + $0x4a] sm:$0x3] %v2292_v14  ;;  %v1452_v23 = vmax.f32 %v1450_v13, %v1451_v51  ;;  %v491_v47 = vld [vmem:[#allocation3 + $0x10] sm:$0x3]  ;;  %v2185_v1 = vld [vmem:[#allocation4 + $0x4a] sm:$0x3] }
  0xea   :  { %v1459_v52 = vmax.f32 %v1457_v59, %v1458_v18  ;;  %137 = vst [vmem:[#allocation3 + $0x4c] sm:$0x3] %v2292_v14  ;;  %v1920_v24 = vsel %vm1259_vm3, %v1433_v19, %v1919_v20  ;;  %v1440_v25 = vmax.f32 %v1438_v16, %v1439_v21  ;;  %v1447_v26 = vmax.f32 %v1445_v17, %v1446_v22  ;;  %v492_v43 = vld [vmem:[#allocation3 + $0x12] sm:$0x3]  ;;  %v493_v4 = vld [vmem:[#allocation3 + $0x14] sm:$0x3] }
  0xeb   :  { %138 = vst [vmem:[#allocation3 + $0x4e] sm:$0x3] %v2292_v14  ;;  %v1453_v27 = vrot.slane %v1452_v23, 1  ;;  %v515_v34 = vld [vmem:[#allocation3 + $0x40] sm:$0x3] }
  0xec   :  { %v1460_v28 = vrot.slane %v1459_v52, 1  ;;  %139 = vst [vmem:[#allocation3 + $0x50] sm:$0x3] %v2292_v14  ;;  %v1921_v30 = vsel %vm1261_vm4, %v1440_v25, %v1920_v24  ;;  %v516_v38 = vld [vmem:[#allocation3 + $0x42] sm:$0x3]  ;;  %v579_v46 = vmax.f32 %v515_v34, %v2180_v41 }
  0xed   :  { %140 = vst [vmem:[#allocation3 + $0x52] sm:$0x3] %v2292_v14  ;;  %v1454_v56 = vmax.f32 %v1452_v23, %v1453_v27  ;;  %v1922_v31 = vsel %vm1263_vm5, %v1447_v26, %v1921_v30  ;;  %v517_v39 = vld [vmem:[#allocation3 + $0x44] sm:$0x3]  ;;  %v580_v61 = vmax.f32 %v516_v38, %v2181_v48  ;;  %v2186_v36 = vld [vmem:[#allocation4 + $0x4c] sm:$0x3] }
  0xee   :  { %v1461_v29 = vmax.f32 %v1459_v52, %v1460_v28  ;;  %141 = vst [vmem:[#allocation3 + $0x54] sm:$0x3] %v2292_v14  ;;  %v518_v40 = vld [vmem:[#allocation3 + $0x46] sm:$0x3]  ;;  %v581_v57 = vmax.f32 %v517_v39, %v2182_v53  ;;  %v2643_v5 = vld [vmem:[#allocation3 + $0x16] sm:$0x3] }
  0xef   :  { %142 = vst [vmem:[#allocation3 + $0x56] sm:$0x3] %v2292_v14  ;;  %v1923_v32 = vsel %vm1265_vm6, %v1454_v56, %v1922_v31  ;;  %v519_v35 = vld [vmem:[#allocation3 + $0x48] sm:$0x3]  ;;  %v582_v55 = vmax.f32 %v518_v40, %v2183_v62  ;;  %v2645_v6 = vld [vmem:[#allocation3 + $0x18] sm:$0x3] }
  0xf0   :  { %143 = vst [vmem:[#allocation3 + $0x58] sm:$0x3] %v2292_v14  ;;  %v1924_v33 = vsel %vm1267_vm7, %v1461_v29, %v1923_v32  ;;  %v520_v49 = vld [vmem:[#allocation3 + $0x4a] sm:$0x3]  ;;  %v583_v42 = vmax.f32 %v519_v35, %v2184_v63  ;;  %v2649_v44 = vld [vmem:[#allocation3 + $0x1c] sm:$0x3] }
  0xf1   :  { %144 = vst [vmem:[#allocation3 + $0x5a] sm:$0x3] %v2292_v14  ;;  %1982 = vmax.xlane.f32.xlu2 %v1924_v33  ;;  %v521_v54 = vld [vmem:[#allocation3 + $0x4c] sm:$0x3]  ;;  %v584_v2 = vmax.f32 %v520_v49, %v2185_v1  ;;  %v2187_v37 = vld [vmem:[#allocation4 + $0x4e] sm:$0x3] }
  0xf2   :  { %145 = vst [vmem:[#allocation3 + $0x5c] sm:$0x3] %v2292_v14  ;;  %v522_v60 = vld [vmem:[#allocation3 + $0x4e] sm:$0x3]  ;;  %v585_v3 = vmax.f32 %v521_v54, %v2186_v36  ;;  %v2651_v7 = vld [vmem:[#allocation3 + $0x1e] sm:$0x3] }
  0xf3   :  { %146 = vst [vmem:[#allocation3 + $0x5e] sm:$0x3] %v2292_v14  ;;  %v586_v8 = vmax.f32 %v522_v60, %v2187_v37  ;;  %v2653_v9 = vld [vmem:[#allocation3 + $0x50] sm:$0x3]  ;;  %v2189_v12 = vld [vmem:[#allocation4 + $0x12] sm:$0x3] }
  0xf4   :  { %147 = vst [vmem:[#allocation3 + $0x60] sm:$0x3] %v2292_v14  ;;  %v2188_v58 = vld [vmem:[#allocation4 + $0x10] sm:$0x3]  ;;  %v2655_v45 = vld [vmem:[#allocation3 + $0x52] sm:$0x3]  ;;  %v556_v13 = vmax.f32 %v492_v43, %v2189_v12 }
  0xf5   :  { %148 = vst [vmem:[#allocation3 + $0x62] sm:$0x3] %v2292_v14  ;;  %v555_v10 = vmax.f32 %v491_v47, %v2188_v58  ;;  %v2657_v11 = vld [vmem:[#allocation3 + $0x54] sm:$0x3]  ;;  %v2191_v18 = vld [vmem:[#allocation4 + $0x16] sm:$0x3] }
  0xf6   :  { %149 = vst [vmem:[#allocation3 + $0x64] sm:$0x3] %v2292_v14  ;;  %v2659_v59 = vld [vmem:[#allocation3 + $0x56] sm:$0x3]  ;;  %v2190_v15 = vld [vmem:[#allocation4 + $0x14] sm:$0x3]  ;;  %v558_v19 = vmax.f32 %v2643_v5, %v2191_v18 }
  0xf7   :  { %150 = vst [vmem:[#allocation3 + $0x66] sm:$0x3] %v2292_v14  ;;  %v2661_v50 = vld [vmem:[#allocation3 + $0x58] sm:$0x3]  ;;  %v557_v0 = vmax.f32 %v493_v4, %v2190_v15  ;;  %v2193_v22 = vld [vmem:[#allocation4 + $0x1a] sm:$0x3] }
  0xf8   :  { %151 = vst [vmem:[#allocation3 + $0x68] sm:$0x3] %v2292_v14  ;;  %v2663_v16 = vld [vmem:[#allocation3 + $0x5a] sm:$0x3]  ;;  %v2192_v20 = vld [vmem:[#allocation4 + $0x18] sm:$0x3] }
  0xf9   :  { %152 = vst [vmem:[#allocation3 + $0x6a] sm:$0x3] %v2292_v14  ;;  %v2665_v17 = vld [vmem:[#allocation3 + $0x5c] sm:$0x3]  ;;  %v559_v21 = vmax.f32 %v2645_v6, %v2192_v20  ;;  %v2195_v28 = vld [vmem:[#allocation4 + $0x1e] sm:$0x3] }
  0xfa   :  { %153 = vst [vmem:[#allocation3 + $0x6c] sm:$0x3] %v2292_v14  ;;  %v2194_v52 = vld [vmem:[#allocation4 + $0x1c] sm:$0x3]  ;;  %v2671_v25 = vld [vmem:[#allocation3 + $0x5e] sm:$0x3]  ;;  %v562_v56 = vmax.f32 %v2651_v7, %v2195_v28 }
  0xfb   :  { %154 = vst [vmem:[#allocation3 + $0x6e] sm:$0x3] %v2292_v14  ;;  %v561_v24 = vmax.f32 %v2649_v44, %v2194_v52  ;;  %v2675_v29 = vld [vmem:[#allocation4 + $0x50] sm:$0x3]  ;;  %v2679_v31 = vld [vmem:[#allocation4 + $0x52] sm:$0x3] }
  0xfc   :  { %155 = vst [vmem:[#allocation3 + $0x70] sm:$0x3] %v2292_v14  ;;  %v587_v30 = vmax.f32 %v2653_v9, %v2675_v29  ;;  %v588_v32 = vmax.f32 %v2655_v45, %v2679_v31  ;;  %v2684_v39 = vld [vmem:[#allocation4 + $0x54] sm:$0x3]  ;;  %v2688_v41 = vld [vmem:[#allocation4 + $0x56] sm:$0x3] }
  0xfd   :  { %156 = vst [vmem:[#allocation3 + $0x72] sm:$0x3] %v2292_v14  ;;  %v589_v40 = vmax.f32 %v2657_v11, %v2684_v39  ;;  %v2693_v49 = vld [vmem:[#allocation4 + $0x58] sm:$0x3]  ;;  %v2707_v36 = vld [vmem:[#allocation4 + $0x5e] sm:$0x3] }
  0xfe   :  { %157 = vst [vmem:[#allocation3 + $0x74] sm:$0x3] %v2292_v14  ;;  %v591_v53 = vmax.f32 %v2661_v50, %v2693_v49 }
  0xff   :  { %158 = vst [vmem:[#allocation3 + $0x76] sm:$0x3] %v2292_v14 }
 0x100   :  { %159 = vst [vmem:[#allocation3 + $0x78] sm:$0x3] %v2292_v14 }
 0x101   :  { %160 = vst [vmem:[#allocation3 + $0x7a] sm:$0x3] %v2292_v14 }
 0x102   :  { %161 = vst [vmem:[#allocation3 + $0x7c] sm:$0x3] %v2292_v14 }
 0x103   :  { %162 = vst [vmem:[#allocation3 + $0x7e] sm:$0x3] %v2292_v14  ;;  %v2647_v14 = vld [vmem:[#allocation3 + $0x1a] sm:$0x3] }
 0x104   :  { %643 = vst [vmem:[#allocation3 + $0x40] sm:$0x3] %v579_v46  ;;  %v560_v23 = vmax.f32 %v2647_v14, %v2193_v22  ;;  %v590_v46 = vmax.f32 %v2659_v59, %v2688_v41 }
 0x105   :  { %644 = vst [vmem:[#allocation3 + $0x42] sm:$0x3] %v580_v61 }
 0x106   :  { %645 = vst [vmem:[#allocation3 + $0x44] sm:$0x3] %v581_v57  ;;  %v2697_v57 = vld [vmem:[#allocation4 + $0x5a] sm:$0x3] }
 0x107   :  { %646 = vst [vmem:[#allocation3 + $0x46] sm:$0x3] %v582_v55  ;;  %v592_v54 = vmax.f32 %v2663_v16, %v2697_v57 }
 0x108   :  { %647 = vst [vmem:[#allocation3 + $0x48] sm:$0x3] %v583_v42  ;;  %v2702_v42 = vld [vmem:[#allocation4 + $0x5c] sm:$0x3] }
 0x109   :  { %648 = vst [vmem:[#allocation3 + $0x4a] sm:$0x3] %v584_v2  ;;  %v593_v47 = vmax.f32 %v2665_v17, %v2702_v42 }
 0x10a   :  { %649 = vst [vmem:[#allocation3 + $0x4c] sm:$0x3] %v585_v3  ;;  %v594_v3 = vmax.f32 %v2671_v25, %v2707_v36 }
 0x10b   :  { %650 = vst [vmem:[#allocation3 + $0x4e] sm:$0x3] %v586_v8  ;;  %v1374_v51 = vld [vmem:[#allocation3 + $0x40] sm:$0x3] }
 0x10c   :  { %v1375_v26 = vld [vmem:[#allocation3 + $0x42] sm:$0x3]  ;;  %v1630_v27 = vsel %vm742_vm0, %v1374_v51, -inf  ;;  %619 = vst [vmem:[#allocation3 + $0x10] sm:$0x3] %v555_v10 }
 0x10d   :  { %v1376_v33 = vld [vmem:[#allocation3 + $0x44] sm:$0x3]  ;;  %v1631_v34 = vrot.slane %v1630_v27, 4  ;;  %v1637_v38 = vsel %vm742_vm0, %v1375_v26, -inf  ;;  %620 = vst [vmem:[#allocation3 + $0x12] sm:$0x3] %v556_v13 }
 0x10e   :  { %v1377_v35 = vld [vmem:[#allocation3 + $0x46] sm:$0x3]  ;;  %v1638_v48 = vrot.slane %v1637_v38, 4  ;;  %v1644_v61 = vsel %vm742_vm0, %v1376_v33, -inf  ;;  %621 = vst [vmem:[#allocation3 + $0x14] sm:$0x3] %v557_v0 }
 0x10f   :  { %v1378_v62 = vld [vmem:[#allocation3 + $0x48] sm:$0x3]  ;;  %v1632_v55 = vmax.f32 %v1630_v27, %v1631_v34  ;;  %v1645_v60 = vrot.slane %v1644_v61, 4  ;;  %v1651_v63 = vsel %vm742_vm0, %v1377_v35, -inf  ;;  %622 = vst [vmem:[#allocation3 + $0x16] sm:$0x3] %v558_v19 }
 0x110   :  { %v1379_v1 = vld [vmem:[#allocation3 + $0x4a] sm:$0x3]  ;;  %v1639_v2 = vmax.f32 %v1637_v38, %v1638_v48  ;;  %v1652_v43 = vrot.slane %v1651_v63, 4  ;;  %v1658_v4 = vsel %vm742_vm0, %v1378_v62, -inf  ;;  %623 = vst [vmem:[#allocation3 + $0x18] sm:$0x3] %v559_v21 }
 0x111   :  { %v1380_v5 = vld [vmem:[#allocation3 + $0x4c] sm:$0x3]  ;;  %v1633_v6 = vrot.slane %v1632_v55, 2  ;;  %v1646_v14 = vmax.f32 %v1644_v61, %v1645_v60  ;;  %v1659_v44 = vrot.slane %v1658_v4, 4  ;;  %v1665_v37 = vsel %vm742_vm0, %v1379_v1, -inf }
 0x112   :  { %v1381_v8 = vld [vmem:[#allocation3 + $0x4e] sm:$0x3]  ;;  %v1640_v7 = vrot.slane %v1639_v2, 2  ;;  %v1653_v58 = vmax.f32 %v1651_v63, %v1652_v43  ;;  %v1666_v10 = vrot.slane %v1665_v37, 4  ;;  %v1672_v12 = vsel %vm742_vm0, %v1380_v5, -inf }
 0x113   :  { %v1634_v13 = vmax.f32 %v1632_v55, %v1633_v6  ;;  %v1647_v15 = vrot.slane %v1646_v14, 2  ;;  %v1660_v0 = vmax.f32 %v1658_v4, %v1659_v44  ;;  %v1673_v51 = vrot.slane %v1672_v12, 4  ;;  %624 = vst [vmem:[#allocation3 + $0x1a] sm:$0x3] %v560_v23  ;;  %v1350_v35 = vld [vmem:[#allocation3 + $0x10] sm:$0x3] }
 0x114   :  { %v1641_v18 = vmax.f32 %v1639_v2, %v1640_v7  ;;  %v1654_v19 = vrot.slane %v1653_v58, 2  ;;  %v1667_v20 = vmax.f32 %v1665_v37, %v1666_v10  ;;  %v1679_v21 = vsel %vm742_vm0, %v1381_v8, -inf  ;;  %625 = vst [vmem:[#allocation3 + $0x1c] sm:$0x3] %v561_v24  ;;  %v1351_v43 = vld [vmem:[#allocation3 + $0x12] sm:$0x3] }
 0x115   :  { %v1635_v22 = vrot.slane %v1634_v13, 1  ;;  %v1648_v52 = vmax.f32 %v1646_v14, %v1647_v15  ;;  %v1661_v26 = vrot.slane %v1660_v0, 2  ;;  %v1674_v27 = vmax.f32 %v1672_v12, %v1673_v51  ;;  %626 = vst [vmem:[#allocation3 + $0x1e] sm:$0x3] %v562_v56  ;;  %v1352_v6 = vld [vmem:[#allocation3 + $0x14] sm:$0x3] }
 0x116   :  { %v1642_v28 = vrot.slane %v1641_v18, 1  ;;  %v1655_v33 = vmax.f32 %v1653_v58, %v1654_v19  ;;  %v1668_v34 = vrot.slane %v1667_v20, 2  ;;  %v1680_v38 = vrot.slane %v1679_v21, 4  ;;  %651 = vst [vmem:[#allocation3 + $0x50] sm:$0x3] %v587_v30 }
 0x117   :  { %v1636_v48 = vmax.f32 %v1634_v13, %v1635_v22  ;;  %v1649_v61 = vrot.slane %v1648_v52, 1  ;;  %v1662_v62 = vmax.f32 %v1660_v0, %v1661_v26  ;;  %v1675_v23 = vrot.slane %v1674_v27, 2  ;;  %652 = vst [vmem:[#allocation3 + $0x52] sm:$0x3] %v588_v32  ;;  %v1353_v14 = vld [vmem:[#allocation3 + $0x16] sm:$0x3] }
 0x118   :  { %v1643_v55 = vmax.f32 %v1641_v18, %v1642_v28  ;;  %v1656_v24 = vrot.slane %v1655_v33, 1  ;;  %v1669_v60 = vmax.f32 %v1667_v20, %v1668_v34  ;;  %v1681_v63 = vmax.f32 %v1679_v21, %v1680_v38  ;;  %653 = vst [vmem:[#allocation3 + $0x54] sm:$0x3] %v589_v40  ;;  %v1354_v37 = vld [vmem:[#allocation3 + $0x18] sm:$0x3] }
 0x119   :  { %v1650_v56 = vmax.f32 %v1648_v52, %v1649_v61  ;;  %v1663_v1 = vrot.slane %v1662_v62, 1  ;;  %v1676_v2 = vmax.f32 %v1674_v27, %v1675_v23  ;;  %v1462_v4 = vsel %vm742_vm0, %v1350_v35, -inf  ;;  %654 = vst [vmem:[#allocation3 + $0x56] sm:$0x3] %v590_v46 }
 0x11a   :  { %v1657_v9 = vmax.f32 %v1655_v33, %v1656_v24  ;;  %v1670_v29 = vrot.slane %v1669_v60, 1  ;;  %v1682_v30 = vrot.slane %v1681_v63, 2  ;;  %v1946_v5 = vsel %vm1255_vm1, %v1643_v55, %v1636_v48  ;;  %655 = vst [vmem:[#allocation3 + $0x58] sm:$0x3] %v591_v53  ;;  %v1355_v46 = vld [vmem:[#allocation3 + $0x1a] sm:$0x3] }
 0x11b   :  { %v1664_v45 = vmax.f32 %v1662_v62, %v1663_v1  ;;  %v1677_v31 = vrot.slane %v1676_v2, 1  ;;  %v1947_v32 = vsel %vm1257_vm2, %v1650_v56, %v1946_v5  ;;  %v1463_v44 = vrot.slane %v1462_v4, 4  ;;  %656 = vst [vmem:[#allocation3 + $0x5a] sm:$0x3] %v592_v54  ;;  %v1356_v57 = vld [vmem:[#allocation3 + $0x1c] sm:$0x3] }
 0x11c   :  { %v1671_v11 = vmax.f32 %v1669_v60, %v1670_v29  ;;  %v1683_v39 = vmax.f32 %v1681_v63, %v1682_v30  ;;  %v1948_v40 = vsel %vm1259_vm3, %v1657_v9, %v1947_v32  ;;  %v1469_v8 = vsel %vm742_vm0, %v1351_v43, -inf  ;;  %657 = vst [vmem:[#allocation3 + $0x5c] sm:$0x3] %v593_v47  ;;  %v1357_v0 = vld [vmem:[#allocation3 + $0x1e] sm:$0x3] }
 0x11d   :  { %v1678_v59 = vmax.f32 %v1676_v2, %v1677_v31  ;;  %v1949_v41 = vsel %vm1261_vm4, %v1664_v45, %v1948_v40  ;;  %v1464_v7 = vmax.f32 %v1462_v4, %v1463_v44  ;;  %v1470_v58 = vrot.slane %v1469_v8, 4  ;;  %658 = vst [vmem:[#allocation3 + $0x5e] sm:$0x3] %v594_v3  ;;  %v1382_v35 = vld [vmem:[#allocation3 + $0x50] sm:$0x3] }
 0x11e   :  { %v1684_v50 = vrot.slane %v1683_v39, 1  ;;  %v1950_v49 = vsel %vm1263_vm5, %v1671_v11, %v1949_v41  ;;  %v1476_v53 = vsel %vm742_vm0, %v1352_v6, -inf  ;;  %v1483_v10 = vsel %vm742_vm0, %v1353_v14, -inf  ;;  %v1383_v5 = vld [vmem:[#allocation3 + $0x52] sm:$0x3] }
 0x11f   :  { %v1951_v16 = vsel %vm1265_vm6, %v1678_v59, %v1950_v49  ;;  %v1465_v54 = vrot.slane %v1464_v7, 2  ;;  %v1471_v12 = vmax.f32 %v1469_v8, %v1470_v58  ;;  %v1477_v13 = vrot.slane %v1476_v53, 4  ;;  %v1384_v40 = vld [vmem:[#allocation3 + $0x54] sm:$0x3] }
 0x120   :  { %v1685_v15 = vmax.f32 %v1683_v39, %v1684_v50  ;;  %v1484_v17 = vrot.slane %v1483_v10, 4  ;;  %v1490_v42 = vsel %vm742_vm0, %v1354_v37, -inf  ;;  %v1497_v47 = vsel %vm742_vm0, %v1355_v46, -inf  ;;  %v1385_v49 = vld [vmem:[#allocation3 + $0x56] sm:$0x3] }
 0x121   :  { %v1466_v51 = vmax.f32 %v1464_v7, %v1465_v54  ;;  %v1472_v18 = vrot.slane %v1471_v12, 2  ;;  %v1478_v19 = vmax.f32 %v1476_v53, %v1477_v13  ;;  %v1491_v20 = vrot.slane %v1490_v42, 4  ;;  %v1386_v53 = vld [vmem:[#allocation3 + $0x58] sm:$0x3] }
 0x122   :  { %v1952_v25 = vsel %vm1267_vm7, %v1685_v15, %v1951_v16  ;;  %v1485_v36 = vmax.f32 %v1483_v10, %v1484_v17  ;;  %v1498_v3 = vrot.slane %v1497_v47, 4  ;;  %v1504_v21 = vsel %vm742_vm0, %v1356_v57, -inf  ;;  %v1387_v17 = vld [vmem:[#allocation3 + $0x5a] sm:$0x3] }
 0x123   :  { %1990 = vmax.xlane.f32.xlu1 %v1952_v25  ;;  %v1467_v22 = vrot.slane %v1466_v51, 1  ;;  %v1473_v52 = vmax.f32 %v1471_v12, %v1472_v18  ;;  %v1479_v26 = vrot.slane %v1478_v19, 2  ;;  %v1492_v27 = vmax.f32 %v1490_v42, %v1491_v20  ;;  %v1388_v25 = vld [vmem:[#allocation3 + $0x5c] sm:$0x3] }
 0x124   :  { %v1486_v28 = vrot.slane %v1485_v36, 2  ;;  %v1499_v33 = vmax.f32 %v1497_v47, %v1498_v3  ;;  %v1505_v34 = vrot.slane %v1504_v21, 4  ;;  %v1511_v38 = vsel %vm742_vm0, %v1357_v0, -inf }
 0x125   :  { %v1468_v48 = vmax.f32 %v1466_v51, %v1467_v22  ;;  %v1474_v61 = vrot.slane %v1473_v52, 1  ;;  %v1480_v62 = vmax.f32 %v1478_v19, %v1479_v26  ;;  %v1493_v23 = vrot.slane %v1492_v27, 2 }
 0x126   :  { %v1487_v55 = vmax.f32 %v1485_v36, %v1486_v28  ;;  %v1500_v24 = vrot.slane %v1499_v33, 2  ;;  %v1506_v60 = vmax.f32 %v1504_v21, %v1505_v34  ;;  %v1512_v63 = vrot.slane %v1511_v38, 4  ;;  %v1389_v28 = vld [vmem:[#allocation3 + $0x5e] sm:$0x3] }
 0x127   :  { %v1475_v56 = vmax.f32 %v1473_v52, %v1474_v61  ;;  %v1481_v1 = vrot.slane %v1480_v62, 1  ;;  %v1494_v2 = vmax.f32 %v1492_v27, %v1493_v23  ;;  %v1686_v43 = vsel %vm742_vm0, %v1382_v35, -inf  ;;  %v531_v35 = vld [vmem:[#allocation3 + $0x60] sm:$0x3] }
 0x128   :  { %v1488_v4 = vrot.slane %v1487_v55, 1  ;;  %v1501_v9 = vmax.f32 %v1499_v33, %v1500_v24  ;;  %v1507_v29 = vrot.slane %v1506_v60, 2  ;;  %v1513_v30 = vmax.f32 %v1511_v38, %v1512_v63 }
 0x129   :  { %v1482_v6 = vmax.f32 %v1480_v62, %v1481_v1  ;;  %v1495_v45 = vrot.slane %v1494_v2, 1  ;;  %v1925_v31 = vsel %vm1255_vm1, %v1475_v56, %v1468_v48  ;;  %v1687_v32 = vrot.slane %v1686_v43, 4  ;;  %v532_v56 = vld [vmem:[#allocation3 + $0x62] sm:$0x3] }
 0x12a   :  { %v1489_v14 = vmax.f32 %v1487_v55, %v1488_v4  ;;  %v1502_v44 = vrot.slane %v1501_v9, 1  ;;  %v1508_v11 = vmax.f32 %v1506_v60, %v1507_v29  ;;  %v1514_v39 = vrot.slane %v1513_v30, 2  ;;  %v533_v4 = vld [vmem:[#allocation3 + $0x64] sm:$0x3] }
 0x12b   :  { %v1496_v37 = vmax.f32 %v1494_v2, %v1495_v45  ;;  %v1926_v8 = vsel %vm1257_vm2, %v1482_v6, %v1925_v31  ;;  %v1688_v59 = vmax.f32 %v1686_v43, %v1687_v32  ;;  %v1693_v41 = vsel %vm742_vm0, %v1383_v5, -inf  ;;  %v534_v31 = vld [vmem:[#allocation3 + $0x66] sm:$0x3]  ;;  %v535_v32 = vld [vmem:[#allocation3 + $0x68] sm:$0x3] }
 0x12c   :  { %v1503_v46 = vmax.f32 %v1501_v9, %v1502_v44  ;;  %v1509_v7 = vrot.slane %v1508_v11, 1  ;;  %v1515_v58 = vmax.f32 %v1513_v30, %v1514_v39  ;;  %v1927_v50 = vsel %vm1259_vm3, %v1489_v14, %v1926_v8  ;;  %v2204_v9 = vld [vmem:[#allocation4 + $0x60] sm:$0x3]  ;;  %v536_v39 = vld [vmem:[#allocation3 + $0x6a] sm:$0x3] }
 0x12d   :  { %v1928_v10 = vsel %vm1261_vm4, %v1496_v37, %v1927_v50  ;;  %v1689_v16 = vrot.slane %v1688_v59, 2  ;;  %v1694_v57 = vrot.slane %v1693_v41, 4  ;;  %v1700_v54 = vsel %vm742_vm0, %v1384_v40, -inf  ;;  %v2205_v40 = vld [vmem:[#allocation4 + $0x62] sm:$0x3] }
 0x12e   :  { %v1510_v12 = vmax.f32 %v1508_v11, %v1509_v7  ;;  %v1516_v13 = vrot.slane %v1515_v58, 1  ;;  %v1929_v15 = vsel %vm1263_vm5, %v1503_v46, %v1928_v10  ;;  %v1701_v42 = vrot.slane %v1700_v54, 4  ;;  %v537_v7 = vld [vmem:[#allocation3 + $0x6c] sm:$0x3]  ;;  %v2206_v10 = vld [vmem:[#allocation4 + $0x64] sm:$0x3] }
 0x12f   :  { %v1690_v47 = vmax.f32 %v1688_v59, %v1689_v16  ;;  %v1695_v0 = vmax.f32 %v1693_v41, %v1694_v57  ;;  %v1707_v51 = vsel %vm742_vm0, %v1385_v49, -inf  ;;  %v1714_v18 = vsel %vm742_vm0, %v1386_v53, -inf  ;;  %v2771_v57 = vld [vmem:[#allocation3 + $0x20] sm:$0x3] }
 0x130   :  { %v1517_v19 = vmax.f32 %v1515_v58, %v1516_v13  ;;  %v1930_v20 = vsel %vm1265_vm6, %v1510_v12, %v1929_v15  ;;  %v1702_v36 = vmax.f32 %v1700_v54, %v1701_v42  ;;  %v1708_v3 = vrot.slane %v1707_v51, 4  ;;  %v2768_v58 = vld [vmem:[#allocation3 + $0x6e] sm:$0x3]  ;;  %v2776_v42 = vld [vmem:[#allocation3 + $0x24] sm:$0x3] }
 0x131   :  { %v1691_v21 = vrot.slane %v1690_v47, 1  ;;  %v1696_v22 = vrot.slane %v1695_v0, 2  ;;  %v1715_v52 = vrot.slane %v1714_v18, 4  ;;  %v1721_v26 = vsel %vm742_vm0, %v1387_v17, -inf  ;;  %v2774_v17 = vld [vmem:[#allocation3 + $0x22] sm:$0x3] }
 0x132   :  { %v1931_v27 = vsel %vm1267_vm7, %v1517_v19, %v1930_v20  ;;  %v1703_v33 = vrot.slane %v1702_v36, 2  ;;  %v1709_v34 = vmax.f32 %v1707_v51, %v1708_v3  ;;  %v1722_v38 = vrot.slane %v1721_v26, 4  ;;  %v2207_v51 = vld [vmem:[#allocation4 + $0x66] sm:$0x3]  ;;  %v2208_v19 = vld [vmem:[#allocation4 + $0x68] sm:$0x3] }
 0x133   :  { %1984 = vmax.xlane.f32.xlu0 %v1931_v27  ;;  %v1692_v48 = vmax.f32 %v1690_v47, %v1691_v21  ;;  %v1697_v61 = vmax.f32 %v1695_v0, %v1696_v22  ;;  %v1716_v62 = vmax.f32 %v1714_v18, %v1715_v52  ;;  %v1728_v23 = vsel %vm742_vm0, %v1388_v25, -inf  ;;  %v2778_v25 = vld [vmem:[#allocation3 + $0x26] sm:$0x3]  ;;  %v2209_v52 = vld [vmem:[#allocation4 + $0x6a] sm:$0x3] }
 0x134   :  { %v1704_v55 = vmax.f32 %v1702_v36, %v1703_v33  ;;  %v1710_v24 = vrot.slane %v1709_v34, 2  ;;  %v1723_v60 = vmax.f32 %v1721_v26, %v1722_v38  ;;  %v1729_v63 = vrot.slane %v1728_v23, 4  ;;  %v2780_v36 = vld [vmem:[#allocation3 + $0x28] sm:$0x3]  ;;  %v2783_v27 = vld [vmem:[#allocation3 + $0x2a] sm:$0x3] }
 0x135   :  { %v1698_v1 = vrot.slane %v1697_v61, 1  ;;  %v1717_v2 = vrot.slane %v1716_v62, 2  ;;  %v1735_v43 = vsel %vm742_vm0, %v1389_v28, -inf  ;;  %v595_v29 = vmax.f32 %v531_v35, %v2204_v9  ;;  %v2785_v28 = vld [vmem:[#allocation3 + $0x2c] sm:$0x3] }
 0x136   :  { %v1705_v30 = vrot.slane %v1704_v55, 1  ;;  %v1711_v5 = vmax.f32 %v1709_v34, %v1710_v24  ;;  %v1724_v6 = vrot.slane %v1723_v60, 2  ;;  %v1730_v45 = vmax.f32 %v1728_v23, %v1729_v63  ;;  %v2210_v38 = vld [vmem:[#allocation4 + $0x6c] sm:$0x3]  ;;  %v2791_v23 = vld [vmem:[#allocation3 + $0x30] sm:$0x3] }
 0x137   :  { %v1699_v14 = vmax.f32 %v1697_v61, %v1698_v1  ;;  %v1718_v44 = vmax.f32 %v1716_v62, %v1717_v2  ;;  %v1736_v11 = vrot.slane %v1735_v43, 4  ;;  %v596_v37 = vmax.f32 %v532_v56, %v2205_v40  ;;  %659 = vst [vmem:[#allocation3 + $0x60] sm:$0x3] %v595_v29  ;;  %v2789_v62 = vld [vmem:[#allocation3 + $0x2e] sm:$0x3] }
 0x138   :  { %v1706_v8 = vmax.f32 %v1704_v55, %v1705_v30  ;;  %v1712_v59 = vrot.slane %v1711_v5, 1  ;;  %v1725_v41 = vmax.f32 %v1723_v60, %v1724_v6  ;;  %v1731_v46 = vrot.slane %v1730_v45, 2  ;;  %v2212_v63 = vld [vmem:[#allocation4 + $0x20] sm:$0x3]  ;;  %v2795_v1 = vld [vmem:[#allocation3 + $0x32] sm:$0x3] }
 0x139   :  { %v1719_v50 = vrot.slane %v1718_v44, 1  ;;  %v1737_v49 = vmax.f32 %v1735_v43, %v1736_v11  ;;  %v1953_v53 = vsel %vm1255_vm1, %v1699_v14, %v1692_v48  ;;  %v597_v16 = vmax.f32 %v533_v4, %v2206_v10  ;;  %660 = vst [vmem:[#allocation3 + $0x62] sm:$0x3] %v596_v37  ;;  %v2211_v48 = vld [vmem:[#allocation4 + $0x6e] sm:$0x3] }
 0x13a   :  { %v1713_v54 = vmax.f32 %v1711_v5, %v1712_v59  ;;  %v1726_v12 = vrot.slane %v1725_v41, 1  ;;  %v1732_v13 = vmax.f32 %v1730_v45, %v1731_v46  ;;  %v1954_v15 = vsel %vm1257_vm2, %v1706_v8, %v1953_v53  ;;  %v2797_v2 = vld [vmem:[#allocation3 + $0x34] sm:$0x3]  ;;  %v2213_v9 = vld [vmem:[#allocation4 + $0x22] sm:$0x3] }
 0x13b   :  { %v1720_v47 = vmax.f32 %v1718_v44, %v1719_v50  ;;  %v1738_v0 = vrot.slane %v1737_v49, 2  ;;  %v598_v18 = vmax.f32 %v534_v31, %v2207_v51  ;;  %v599_v20 = vmax.f32 %v535_v32, %v2208_v19  ;;  %661 = vst [vmem:[#allocation3 + $0x64] sm:$0x3] %v597_v16  ;;  %v2214_v30 = vld [vmem:[#allocation4 + $0x24] sm:$0x3] }
 0x13c   :  { %v1727_v3 = vmax.f32 %v1725_v41, %v1726_v12  ;;  %v1733_v21 = vrot.slane %v1732_v13, 1  ;;  %v1955_v22 = vsel %vm1259_vm3, %v1713_v54, %v1954_v15  ;;  %v600_v26 = vmax.f32 %v536_v39, %v2209_v52  ;;  %v2802_v6 = vld [vmem:[#allocation3 + $0x36] sm:$0x3]  ;;  %v2215_v14 = vld [vmem:[#allocation4 + $0x26] sm:$0x3] }
 0x13d   :  { %v1739_v33 = vmax.f32 %v1737_v49, %v1738_v0  ;;  %v1956_v34 = vsel %vm1261_vm4, %v1720_v47, %v1955_v22  ;;  %v601_v35 = vmax.f32 %v537_v7, %v2210_v38  ;;  %v602_v61 = vmax.f32 %v2768_v58, %v2211_v48  ;;  %662 = vst [vmem:[#allocation3 + $0x66] sm:$0x3] %v598_v18  ;;  %v2216_v11 = vld [vmem:[#allocation4 + $0x28] sm:$0x3]  ;;  %v2807_v40 = vld [vmem:[#allocation3 + $0x38] sm:$0x3] }
 0x13e   :  { %v1734_v55 = vmax.f32 %v1732_v13, %v1733_v21  ;;  %v1957_v24 = vsel %vm1263_vm5, %v1727_v3, %v1956_v34  ;;  %663 = vst [vmem:[#allocation3 + $0x68] sm:$0x3] %v599_v20  ;;  %v1390_v60 = vld [vmem:[#allocation3 + $0x60] sm:$0x3]  ;;  %v563_v56 = vmax.f32 %v2771_v57, %v2212_v63  ;;  %v564_v29 = vmax.f32 %v2774_v17, %v2213_v9  ;;  %v2809_v37 = vld [vmem:[#allocation3 + $0x3a] sm:$0x3] }
 0x13f   :  { %v1740_v43 = vrot.slane %v1739_v33, 1  ;;  %664 = vst [vmem:[#allocation3 + $0x6a] sm:$0x3] %v600_v26  ;;  %v1742_v4 = vsel %vm742_vm0, %v1390_v60, -inf  ;;  %v565_v5 = vmax.f32 %v2776_v42, %v2214_v30  ;;  %v566_v44 = vmax.f32 %v2778_v25, %v2215_v14  ;;  %v2217_v41 = vld [vmem:[#allocation4 + $0x2a] sm:$0x3] }
 0x140   :  { %v1958_v45 = vsel %vm1265_vm6, %v1734_v55, %v1957_v24  ;;  %665 = vst [vmem:[#allocation3 + $0x6c] sm:$0x3] %v601_v35  ;;  %v1391_v31 = vld [vmem:[#allocation3 + $0x62] sm:$0x3]  ;;  %v1743_v32 = vrot.slane %v1742_v4, 4  ;;  %v567_v39 = vmax.f32 %v2780_v36, %v2216_v11  ;;  %v568_v46 = vmax.f32 %v2783_v27, %v2217_v41 }
 0x141   :  { %v1741_v8 = vmax.f32 %v1739_v33, %v1740_v43  ;;  %666 = vst [vmem:[#allocation3 + $0x6e] sm:$0x3] %v602_v61  ;;  %v1749_v59 = vsel %vm742_vm0, %v1391_v31, -inf  ;;  %v2218_v7 = vld [vmem:[#allocation4 + $0x2c] sm:$0x3] }
 0x142   :  { %v569_v58 = vmax.f32 %v2785_v28, %v2218_v7  ;;  %v2814_v50 = vld [vmem:[#allocation3 + $0x3c] sm:$0x3]  ;;  %v1392_v49 = vld [vmem:[#allocation3 + $0x64] sm:$0x3]  ;;  %v1744_v53 = vmax.f32 %v1742_v4, %v1743_v32  ;;  %v1750_v10 = vrot.slane %v1749_v59, 4 }
 0x143   :  { %v2219_v16 = vld [vmem:[#allocation4 + $0x2e] sm:$0x3]  ;;  %627 = vst [vmem:[#allocation3 + $0x20] sm:$0x3] %v563_v56  ;;  %v2817_v54 = vld [vmem:[#allocation3 + $0x3e] sm:$0x3]  ;;  %v1959_v15 = vsel %vm1267_vm7, %v1741_v8, %v1958_v45 }
 0x144   :  { %v570_v57 = vmax.f32 %v2789_v62, %v2219_v16  ;;  %v2220_v12 = vld [vmem:[#allocation4 + $0x30] sm:$0x3]  ;;  %v1756_v17 = vsel %vm742_vm0, %v1392_v49, -inf  ;;  %628 = vst [vmem:[#allocation3 + $0x22] sm:$0x3] %v564_v29  ;;  %1992 = vmax.xlane.f32.xlu2 %v1959_v15  ;;  %v1745_v20 = vrot.slane %v1744_v53, 2  ;;  %v1751_v25 = vmax.f32 %v1749_v59, %v1750_v10 }
 0x145   :  { %v571_v13 = vmax.f32 %v2791_v23, %v2220_v12  ;;  %v2221_v42 = vld [vmem:[#allocation4 + $0x32] sm:$0x3]  ;;  %v2823_v0 = vld [vmem:[#allocation4 + $0x34] sm:$0x3]  ;;  %v2827_v18 = vld [vmem:[#allocation3 + $0x70] sm:$0x3] }
 0x146   :  { %v572_v47 = vmax.f32 %v2795_v1, %v2221_v42  ;;  %v573_v51 = vmax.f32 %v2797_v2, %v2823_v0  ;;  %v1393_v19 = vld [vmem:[#allocation3 + $0x66] sm:$0x3]  ;;  %v1757_v36 = vrot.slane %v1756_v17, 4  ;;  %629 = vst [vmem:[#allocation3 + $0x24] sm:$0x3] %v565_v5  ;;  %v1746_v48 = vmax.f32 %v1744_v53, %v1745_v20 }
 0x147   :  { %v2223_v3 = vld [vmem:[#allocation4 + $0x36] sm:$0x3]  ;;  %v1394_v22 = vld [vmem:[#allocation3 + $0x68] sm:$0x3]  ;;  %v1763_v52 = vsel %vm742_vm0, %v1393_v19, -inf  ;;  %v1752_v61 = vrot.slane %v1751_v25, 2 }
 0x148   :  { %v574_v21 = vmax.f32 %v2802_v6, %v2223_v3  ;;  %630 = vst [vmem:[#allocation3 + $0x26] sm:$0x3] %v566_v44  ;;  %v2224_v26 = vld [vmem:[#allocation4 + $0x38] sm:$0x3]  ;;  %v2832_v28 = vld [vmem:[#allocation4 + $0x3a] sm:$0x3]  ;;  %v1758_v62 = vmax.f32 %v1756_v17, %v1757_v36 }
 0x149   :  { %v575_v27 = vmax.f32 %v2807_v40, %v2224_v26  ;;  %v576_v33 = vmax.f32 %v2809_v37, %v2832_v28  ;;  %v2836_v34 = vld [vmem:[#allocation4 + $0x3c] sm:$0x3]  ;;  %v1395_v35 = vld [vmem:[#allocation3 + $0x6a] sm:$0x3]  ;;  %v1764_v23 = vrot.slane %v1763_v52, 4  ;;  %v1770_v24 = vsel %vm742_vm0, %v1394_v22, -inf }
 0x14a   :  { %v577_v38 = vmax.f32 %v2814_v50, %v2836_v34  ;;  %631 = vst [vmem:[#allocation3 + $0x28] sm:$0x3] %v567_v39  ;;  %v1396_v55 = vld [vmem:[#allocation3 + $0x6c] sm:$0x3]  ;;  %v1777_v60 = vsel %vm742_vm0, %v1395_v35, -inf  ;;  %v1747_v9 = vrot.slane %v1746_v48, 1  ;;  %v1753_v29 = vmax.f32 %v1751_v25, %v1752_v61 }
 0x14b   :  { %632 = vst [vmem:[#allocation3 + $0x2a] sm:$0x3] %v568_v46  ;;  %v2227_v63 = vld [vmem:[#allocation4 + $0x3e] sm:$0x3]  ;;  %v2843_v1 = vld [vmem:[#allocation4 + $0x70] sm:$0x3]  ;;  %v1765_v5 = vmax.f32 %v1763_v52, %v1764_v23 }
 0x14c   :  { %v578_v56 = vmax.f32 %v2817_v54, %v2227_v63  ;;  %v603_v43 = vmax.f32 %v2827_v18, %v2843_v1  ;;  %v1397_v4 = vld [vmem:[#allocation3 + $0x6e] sm:$0x3]  ;;  %v1759_v30 = vrot.slane %v1758_v62, 2  ;;  %633 = vst [vmem:[#allocation3 + $0x2c] sm:$0x3] %v569_v58  ;;  %v1771_v6 = vrot.slane %v1770_v24, 4 }
 0x14d   :  { %v1778_v45 = vrot.slane %v1777_v60, 4  ;;  %v1784_v31 = vsel %vm742_vm0, %v1396_v55, -inf  ;;  %v1791_v32 = vsel %vm742_vm0, %v1397_v4, -inf  ;;  %634 = vst [vmem:[#allocation3 + $0x2e] sm:$0x3] %v570_v57  ;;  %v1748_v14 = vmax.f32 %v1746_v48, %v1747_v9 }
 0x14e   :  { %v1754_v44 = vrot.slane %v1753_v29, 1  ;;  %v1760_v11 = vmax.f32 %v1758_v62, %v1759_v30  ;;  %v1766_v39 = vrot.slane %v1765_v5, 2  ;;  %v1358_v40 = vld [vmem:[#allocation3 + $0x20] sm:$0x3]  ;;  %v1772_v8 = vmax.f32 %v1770_v24, %v1771_v6  ;;  %635 = vst [vmem:[#allocation3 + $0x30] sm:$0x3] %v571_v13 }
 0x14f   :  { %v1779_v59 = vmax.f32 %v1777_v60, %v1778_v45  ;;  %v1785_v41 = vrot.slane %v1784_v31, 4  ;;  %v1792_v46 = vrot.slane %v1791_v32, 4  ;;  %v1518_v53 = vsel %vm742_vm0, %v1358_v40, -inf  ;;  %636 = vst [vmem:[#allocation3 + $0x32] sm:$0x3] %v572_v47 }
 0x150   :  { %v1755_v7 = vmax.f32 %v1753_v29, %v1754_v44  ;;  %v1761_v49 = vrot.slane %v1760_v11, 1  ;;  %v1767_v58 = vmax.f32 %v1765_v5, %v1766_v39  ;;  %v1773_v10 = vrot.slane %v1772_v8, 2  ;;  %v1359_v12 = vld [vmem:[#allocation3 + $0x22] sm:$0x3]  ;;  %637 = vst [vmem:[#allocation3 + $0x34] sm:$0x3] %v573_v51 }
 0x151   :  { %v1780_v16 = vrot.slane %v1779_v59, 2  ;;  %v1786_v54 = vmax.f32 %v1784_v31, %v1785_v41  ;;  %v1793_v57 = vmax.f32 %v1791_v32, %v1792_v46  ;;  %v1519_v13 = vrot.slane %v1518_v53, 4  ;;  %638 = vst [vmem:[#allocation3 + $0x36] sm:$0x3] %v574_v21  ;;  %v1360_v47 = vld [vmem:[#allocation3 + $0x24] sm:$0x3] }
 0x152   :  { %v1762_v15 = vmax.f32 %v1760_v11, %v1761_v49  ;;  %v1768_v17 = vrot.slane %v1767_v58, 1  ;;  %v1960_v42 = vsel %vm1255_vm1, %v1755_v7, %v1748_v14  ;;  %v1774_v19 = vmax.f32 %v1772_v8, %v1773_v10  ;;  %639 = vst [vmem:[#allocation3 + $0x38] sm:$0x3] %v575_v27  ;;  %v1361_v35 = vld [vmem:[#allocation3 + $0x26] sm:$0x3] }
 0x153   :  { %v1781_v20 = vmax.f32 %v1779_v59, %v1780_v16  ;;  %v1787_v25 = vrot.slane %v1786_v54, 2  ;;  %v1794_v36 = vrot.slane %v1793_v57, 2  ;;  %v1520_v52 = vmax.f32 %v1518_v53, %v1519_v13  ;;  %640 = vst [vmem:[#allocation3 + $0x3a] sm:$0x3] %v576_v33  ;;  %v1362_v33 = vld [vmem:[#allocation3 + $0x28] sm:$0x3] }
 0x154   :  { %v1769_v3 = vmax.f32 %v1767_v58, %v1768_v17  ;;  %v1961_v22 = vsel %vm1257_vm2, %v1762_v15, %v1960_v42  ;;  %v1525_v26 = vsel %vm742_vm0, %v1359_v12, -inf  ;;  %v1775_v2 = vrot.slane %v1774_v19, 1  ;;  %641 = vst [vmem:[#allocation3 + $0x3c] sm:$0x3] %v577_v38  ;;  %v1363_v24 = vld [vmem:[#allocation3 + $0x2a] sm:$0x3] }
 0x155   :  { %v1782_v0 = vrot.slane %v1781_v20, 1  ;;  %v1788_v51 = vmax.f32 %v1786_v54, %v1787_v25  ;;  %v1795_v21 = vmax.f32 %v1793_v57, %v1794_v36  ;;  %v1521_v48 = vrot.slane %v1520_v52, 2  ;;  %642 = vst [vmem:[#allocation3 + $0x3e] sm:$0x3] %v578_v56  ;;  %v1364_v5 = vld [vmem:[#allocation3 + $0x2c] sm:$0x3] }
 0x156   :  { %v1962_v27 = vsel %vm1259_vm3, %v1769_v3, %v1961_v22  ;;  %v1526_v61 = vrot.slane %v1525_v26, 4  ;;  %v1532_v62 = vsel %vm742_vm0, %v1360_v47, -inf  ;;  %v1776_v23 = vmax.f32 %v1774_v19, %v1775_v2  ;;  %v1365_v32 = vld [vmem:[#allocation3 + $0x2e] sm:$0x3]  ;;  %v1366_v58 = vld [vmem:[#allocation3 + $0x30] sm:$0x3] }
 0x157   :  { %v1783_v55 = vmax.f32 %v1781_v20, %v1782_v0  ;;  %v1789_v37 = vrot.slane %v1788_v51, 1  ;;  %v1796_v28 = vrot.slane %v1795_v21, 1  ;;  %v1522_v60 = vmax.f32 %v1520_v52, %v1521_v48  ;;  %667 = vst [vmem:[#allocation3 + $0x70] sm:$0x3] %v603_v43  ;;  %v1367_v22 = vld [vmem:[#allocation3 + $0x32] sm:$0x3] }
 0x158   :  { %v1527_v63 = vmax.f32 %v1525_v26, %v1526_v61  ;;  %v1533_v4 = vrot.slane %v1532_v62, 4  ;;  %v1539_v9 = vsel %vm742_vm0, %v1361_v35, -inf  ;;  %v1963_v38 = vsel %vm1261_vm4, %v1776_v23, %v1962_v27  ;;  %v1368_v1 = vld [vmem:[#allocation3 + $0x34] sm:$0x3] }
 0x159   :  { %v1790_v50 = vmax.f32 %v1788_v51, %v1789_v37  ;;  %v1797_v34 = vmax.f32 %v1795_v21, %v1796_v28  ;;  %v1540_v29 = vrot.slane %v1539_v9, 4  ;;  %v1964_v30 = vsel %vm1263_vm5, %v1783_v55, %v1963_v38  ;;  %v1369_v28 = vld [vmem:[#allocation3 + $0x36] sm:$0x3] }
 0x15a   :  { %v1523_v56 = vrot.slane %v1522_v60, 1  ;;  %v1528_v6 = vrot.slane %v1527_v63, 2  ;;  %v1534_v45 = vmax.f32 %v1532_v62, %v1533_v4  ;;  %v1546_v44 = vsel %vm742_vm0, %v1362_v33, -inf }
 0x15b   :  { %v1965_v31 = vsel %vm1265_vm6, %v1790_v50, %v1964_v30  ;;  %v1541_v14 = vmax.f32 %v1539_v9, %v1540_v29  ;;  %v1553_v11 = vsel %vm742_vm0, %v1363_v24, -inf  ;;  %v1547_v46 = vrot.slane %v1546_v44, 4 }
 0x15c   :  { %v1966_v39 = vsel %vm1267_vm7, %v1797_v34, %v1965_v31  ;;  %v1524_v40 = vmax.f32 %v1522_v60, %v1523_v56  ;;  %v1529_v8 = vmax.f32 %v1527_v63, %v1528_v6  ;;  %v1535_v59 = vrot.slane %v1534_v45, 2  ;;  %v1370_v34 = vld [vmem:[#allocation3 + $0x38] sm:$0x3]  ;;  %v1371_v31 = vld [vmem:[#allocation3 + $0x3a] sm:$0x3] }
 0x15d   :  { %1994 = vmax.xlane.f32.xlu1 %v1966_v39  ;;  %v1542_v41 = vrot.slane %v1541_v14, 2  ;;  %v1554_v7 = vrot.slane %v1553_v11, 4  ;;  %v1560_v49 = vsel %vm742_vm0, %v1364_v5, -inf  ;;  %v1567_v54 = vsel %vm742_vm0, %v1365_v32, -inf }
 0x15e   :  { %v1530_v53 = vrot.slane %v1529_v8, 1  ;;  %v1536_v10 = vmax.f32 %v1534_v45, %v1535_v59  ;;  %v1561_v16 = vrot.slane %v1560_v49, 4  ;;  %v1548_v12 = vmax.f32 %v1546_v44, %v1547_v46  ;;  %v1373_v46 = vld [vmem:[#allocation3 + $0x3e] sm:$0x3] }
 0x15f   :  { %v1543_v57 = vmax.f32 %v1541_v14, %v1542_v41  ;;  %v1555_v15 = vmax.f32 %v1553_v11, %v1554_v7  ;;  %v1568_v17 = vrot.slane %v1567_v54, 4  ;;  %v1574_v20 = vsel %vm742_vm0, %v1366_v58, -inf  ;;  %v1372_v41 = vld [vmem:[#allocation3 + $0x3c] sm:$0x3] }
 0x160   :  { %v1531_v42 = vmax.f32 %v1529_v8, %v1530_v53  ;;  %v1537_v13 = vrot.slane %v1536_v10, 1  ;;  %v1562_v19 = vmax.f32 %v1560_v49, %v1561_v16  ;;  %v1549_v36 = vrot.slane %v1548_v12, 2  ;;  %v540_v8 = vld [vmem:[#allocation3 + $0x72] sm:$0x3] }
 0x161   :  { %v1544_v25 = vrot.slane %v1543_v57, 1  ;;  %v1556_v47 = vrot.slane %v1555_v15, 2  ;;  %v1569_v3 = vmax.f32 %v1567_v54, %v1568_v17  ;;  %v1575_v0 = vrot.slane %v1574_v20, 4 }
 0x162   :  { %v1538_v52 = vmax.f32 %v1536_v10, %v1537_v13  ;;  %v1563_v26 = vrot.slane %v1562_v19, 2  ;;  %v1932_v2 = vsel %vm1255_vm1, %v1531_v42, %v1524_v40  ;;  %v1550_v21 = vmax.f32 %v1548_v12, %v1549_v36  ;;  %v541_v42 = vld [vmem:[#allocation3 + $0x74] sm:$0x3] }
 0x163   :  { %v1545_v51 = vmax.f32 %v1543_v57, %v1544_v25  ;;  %v1557_v35 = vmax.f32 %v1555_v15, %v1556_v47  ;;  %v1570_v18 = vrot.slane %v1569_v3, 2  ;;  %v1576_v48 = vmax.f32 %v1574_v20, %v1575_v0  ;;  %v2229_v25 = vld [vmem:[#allocation4 + $0x72] sm:$0x3] }
 0x164   :  { %v1564_v43 = vmax.f32 %v1562_v19, %v1563_v26  ;;  %v1933_v27 = vsel %vm1257_vm2, %v1538_v52, %v1932_v2  ;;  %v1581_v61 = vsel %vm742_vm0, %v1367_v22, -inf  ;;  %v1551_v62 = vrot.slane %v1550_v21, 1  ;;  %v542_v26 = vld [vmem:[#allocation3 + $0x76] sm:$0x3] }
 0x165   :  { %v1558_v23 = vrot.slane %v1557_v35, 1  ;;  %v1571_v55 = vmax.f32 %v1569_v3, %v1570_v18  ;;  %v1934_v37 = vsel %vm1259_vm3, %v1545_v51, %v1933_v27  ;;  %v1577_v24 = vrot.slane %v1576_v48, 2 }
 0x166   :  { %v1565_v33 = vrot.slane %v1564_v43, 1  ;;  %v1582_v60 = vrot.slane %v1581_v61, 4  ;;  %v1588_v63 = vsel %vm742_vm0, %v1368_v1, -inf  ;;  %v1552_v4 = vmax.f32 %v1550_v21, %v1551_v62  ;;  %v2230_v21 = vld [vmem:[#allocation4 + $0x74] sm:$0x3] }
 0x167   :  { %v1559_v9 = vmax.f32 %v1557_v35, %v1558_v23  ;;  %v1572_v50 = vrot.slane %v1571_v55, 1  ;;  %v1589_v38 = vrot.slane %v1588_v63, 4  ;;  %v1578_v30 = vmax.f32 %v1576_v48, %v1577_v24  ;;  %v543_v48 = vld [vmem:[#allocation3 + $0x78] sm:$0x3] }
 0x168   :  { %v1566_v29 = vmax.f32 %v1564_v43, %v1565_v33  ;;  %v1583_v5 = vmax.f32 %v1581_v61, %v1582_v60  ;;  %v1595_v56 = vsel %vm742_vm0, %v1369_v28, -inf  ;;  %v1935_v45 = vsel %vm1261_vm4, %v1552_v4, %v1934_v37  ;;  %v544_v61 = vld [vmem:[#allocation3 + $0x7a] sm:$0x3]  ;;  %v545_v37 = vld [vmem:[#allocation3 + $0x7c] sm:$0x3] }
 0x169   :  { %v1573_v6 = vmax.f32 %v1571_v55, %v1572_v50  ;;  %v1590_v32 = vmax.f32 %v1588_v63, %v1589_v38  ;;  %v1596_v14 = vrot.slane %v1595_v56, 4  ;;  %v1936_v44 = vsel %vm1263_vm5, %v1559_v9, %v1935_v45  ;;  %v2231_v28 = vld [vmem:[#allocation4 + $0x76] sm:$0x3]  ;;  %v546_v9 = vld [vmem:[#allocation3 + $0x7e] sm:$0x3] }
 0x16a   :  { %v1579_v11 = vrot.slane %v1578_v30, 1  ;;  %v1584_v39 = vrot.slane %v1583_v5, 2  ;;  %v1602_v40 = vsel %vm742_vm0, %v1370_v34, -inf  ;;  %v1937_v59 = vsel %vm1265_vm6, %v1566_v29, %v1936_v44  ;;  %v1398_v50 = vld [vmem:[#allocation3 + $0x70] sm:$0x3] }
 0x16b   :  { %v1591_v7 = vrot.slane %v1590_v32, 2  ;;  %v1597_v49 = vmax.f32 %v1595_v56, %v1596_v14  ;;  %v1603_v58 = vrot.slane %v1602_v40, 4  ;;  %v1938_v53 = vsel %vm1267_vm7, %v1573_v6, %v1937_v59  ;;  %v2232_v29 = vld [vmem:[#allocation4 + $0x78] sm:$0x3] }
 0x16c   :  { %v1580_v10 = vmax.f32 %v1578_v30, %v1579_v11  ;;  %v1585_v16 = vmax.f32 %v1583_v5, %v1584_v39  ;;  %v1609_v54 = vsel %vm742_vm0, %v1371_v31, -inf  ;;  %1986 = vmax.xlane.f32.xlu0 %v1938_v53  ;;  %v1616_v19 = vsel %vm742_vm0, %v1372_v41, -inf  ;;  %v2233_v5 = vld [vmem:[#allocation4 + $0x7a] sm:$0x3]  ;;  %v2235_v39 = vld [vmem:[#allocation4 + $0x7e] sm:$0x3] }
 0x16d   :  { %v1592_v57 = vmax.f32 %v1590_v32, %v1591_v7  ;;  %v1598_v12 = vrot.slane %v1597_v49, 2  ;;  %v1604_v15 = vmax.f32 %v1602_v40, %v1603_v58  ;;  %v1610_v17 = vrot.slane %v1609_v54, 4  ;;  %v2234_v32 = vld [vmem:[#allocation4 + $0x7c] sm:$0x3] }
 0x16e   :  { %v1586_v13 = vrot.slane %v1585_v16, 1  ;;  %v1623_v20 = vsel %vm742_vm0, %v1373_v46, -inf  ;;  %v604_v36 = vmax.f32 %v540_v8, %v2229_v25  ;;  %v1617_v0 = vrot.slane %v1616_v19, 4 }
 0x16f   :  { %v1593_v47 = vrot.slane %v1592_v57, 1  ;;  %v1599_v3 = vmax.f32 %v1597_v49, %v1598_v12  ;;  %v1605_v22 = vrot.slane %v1604_v15, 2  ;;  %v1611_v52 = vmax.f32 %v1609_v54, %v1610_v17 }
 0x170   :  { %v1587_v2 = vmax.f32 %v1585_v16, %v1586_v13  ;;  %v1624_v51 = vrot.slane %v1623_v20, 4  ;;  %v605_v35 = vmax.f32 %v541_v42, %v2230_v21  ;;  %668 = vst [vmem:[#allocation3 + $0x72] sm:$0x3] %v604_v36  ;;  %v1618_v62 = vmax.f32 %v1616_v19, %v1617_v0 }
 0x171   :  { %v1594_v18 = vmax.f32 %v1592_v57, %v1593_v47  ;;  %v1600_v1 = vrot.slane %v1599_v3, 1  ;;  %v1606_v43 = vmax.f32 %v1604_v15, %v1605_v22  ;;  %v1612_v27 = vrot.slane %v1611_v52, 2 }
 0x172   :  { %v1625_v23 = vmax.f32 %v1623_v20, %v1624_v51  ;;  %v1939_v55 = vsel %vm1255_vm1, %v1587_v2, %v1580_v10  ;;  %v606_v33 = vmax.f32 %v542_v26, %v2231_v28  ;;  %669 = vst [vmem:[#allocation3 + $0x74] sm:$0x3] %v605_v35  ;;  %v1619_v34 = vrot.slane %v1618_v62, 2 }
 0x173   :  { %v1601_v24 = vmax.f32 %v1599_v3, %v1600_v1  ;;  %v1607_v60 = vrot.slane %v1606_v43, 1  ;;  %v1613_v63 = vmax.f32 %v1611_v52, %v1612_v27  ;;  %v1940_v4 = vsel %vm1257_vm2, %v1594_v18, %v1939_v55 }
 0x174   :  { %v1626_v38 = vrot.slane %v1625_v23, 2  ;;  %v607_v30 = vmax.f32 %v543_v48, %v2232_v29  ;;  %v608_v56 = vmax.f32 %v544_v61, %v2233_v5  ;;  %670 = vst [vmem:[#allocation3 + $0x76] sm:$0x3] %v606_v33  ;;  %v609_v14 = vmax.f32 %v545_v37, %v2234_v32 }
 0x175   :  { %v1608_v6 = vmax.f32 %v1606_v43, %v1607_v60  ;;  %v1614_v45 = vrot.slane %v1613_v63, 1  ;;  %v1941_v31 = vsel %vm1259_vm3, %v1601_v24, %v1940_v4  ;;  %v1620_v44 = vmax.f32 %v1618_v62, %v1619_v34 }
 0x176   :  { %v1627_v11 = vmax.f32 %v1625_v23, %v1626_v38  ;;  %v610_v40 = vmax.f32 %v546_v9, %v2235_v39  ;;  %671 = vst [vmem:[#allocation3 + $0x78] sm:$0x3] %v607_v30  ;;  %v1798_v8 = vsel %vm742_vm0, %v1398_v50, -inf }
 0x177   :  { %v1615_v59 = vmax.f32 %v1613_v63, %v1614_v45  ;;  %v1942_v41 = vsel %vm1261_vm4, %v1608_v6, %v1941_v31  ;;  %672 = vst [vmem:[#allocation3 + $0x7a] sm:$0x3] %v608_v56  ;;  %v1399_v46 = vld [vmem:[#allocation3 + $0x72] sm:$0x3]  ;;  %v1799_v7 = vrot.slane %v1798_v8, 4  ;;  %v1621_v49 = vrot.slane %v1620_v44, 1 }
 0x178   :  { %v1628_v58 = vrot.slane %v1627_v11, 1  ;;  %673 = vst [vmem:[#allocation3 + $0x7c] sm:$0x3] %v609_v14  ;;  %v1805_v53 = vsel %vm742_vm0, %v1399_v46, -inf }
 0x179   :  { %v1943_v10 = vsel %vm1263_vm5, %v1615_v59, %v1942_v41  ;;  %674 = vst [vmem:[#allocation3 + $0x7e] sm:$0x3] %v610_v40  ;;  %v1400_v16 = vld [vmem:[#allocation3 + $0x74] sm:$0x3]  ;;  %v1800_v54 = vmax.f32 %v1798_v8, %v1799_v7  ;;  %v1806_v57 = vrot.slane %v1805_v53, 4  ;;  %v1622_v12 = vmax.f32 %v1620_v44, %v1621_v49 }
 0x17a   :  { %v1629_v15 = vmax.f32 %v1627_v11, %v1628_v58  ;;  %v1812_v17 = vsel %vm742_vm0, %v1400_v16, -inf }
 0x17b   :  { %v1401_v42 = vld [vmem:[#allocation3 + $0x76] sm:$0x3]  ;;  %v1801_v13 = vrot.slane %v1800_v54, 2  ;;  %v1807_v19 = vmax.f32 %v1805_v53, %v1806_v57  ;;  %v1813_v20 = vrot.slane %v1812_v17, 4  ;;  %v1944_v25 = vsel %vm1265_vm6, %v1622_v12, %v1943_v10 }
 0x17c   :  { %v1819_v36 = vsel %vm742_vm0, %v1401_v42, -inf  ;;  %v1945_v47 = vsel %vm1267_vm7, %v1629_v15, %v1944_v25  ;;  %v1327_v42 = vpop.xlane.xlu0 %1326 }
 0x17d   :  { %v1402_v3 = vld [vmem:[#allocation3 + $0x78] sm:$0x3]  ;;  %v1802_v22 = vmax.f32 %v1800_v54, %v1801_v13  ;;  %v1808_v52 = vrot.slane %v1807_v19, 2  ;;  %v1814_v26 = vmax.f32 %v1812_v17, %v1813_v20  ;;  %1988 = vmax.xlane.f32.xlu2 %v1945_v47  ;;  %v1820_v0 = vrot.slane %v1819_v36, 4  ;;  %v1331_v20 = vpop.xlane.xlu2 %1330 }
 0x17e   :  { %v1403_v2 = vld [vmem:[#allocation3 + $0x7a] sm:$0x3]  ;;  %v1826_v51 = vsel %vm742_vm0, %v1402_v3, -inf  ;;  %v2065_v3 = vld [vmem:[%s2943_s1 + $0x10] sm:$0xff] }
 0x17f   :  { %v1404_v21 = vld [vmem:[#allocation3 + $0x7c] sm:$0x3]  ;;  %v1803_v35 = vrot.slane %v1802_v22, 1  ;;  %v1809_v18 = vmax.f32 %v1807_v19, %v1808_v52  ;;  %v1815_v1 = vrot.slane %v1814_v26, 2  ;;  %v1827_v43 = vrot.slane %v1826_v51, 4  ;;  %v1335_v19 = vpop.xlane.xlu1 %1334  ;;  %v2064_v52 = vld [vmem:[%s2943_s1 + $0x8] sm:$0xff] }
 0x180   :  { %v1405_v27 = vld [vmem:[#allocation3 + $0x7e] sm:$0x3]  ;;  %v1821_v48 = vmax.f32 %v1819_v36, %v1820_v0  ;;  %v1833_v61 = vsel %vm742_vm0, %v1403_v2, -inf  ;;  %v1840_v62 = vsel %vm742_vm0, %v1404_v21, -inf  ;;  %v2014_v21 = vlaneseq }
 0x181   :  { %v1804_v23 = vmax.f32 %v1802_v22, %v1803_v35  ;;  %v1810_v55 = vrot.slane %v1809_v18, 1  ;;  %v1816_v37 = vmax.f32 %v1814_v26, %v1815_v1  ;;  %v1828_v28 = vmax.f32 %v1826_v51, %v1827_v43  ;;  %v2066_v13 = vld [vmem:[%s2943_s1 + $0x18] sm:$0xff]  ;;  %v2063_v26 = vld [vmem:[%s2943_s1] sm:$0xff] }
 0x182   :  { %v1822_v33 = vrot.slane %v1821_v48, 2  ;;  %v1834_v24 = vrot.slane %v1833_v61, 4  ;;  %v1841_v60 = vrot.slane %v1840_v62, 4  ;;  %v1847_v63 = vsel %vm742_vm0, %v1405_v27, -inf  ;;  %2084 = vmatpush.msra.mxu0 %v2066_v13 }
 0x183   :  { %v1811_v4 = vmax.f32 %v1809_v18, %v1810_v55  ;;  %v1817_v9 = vrot.slane %v1816_v37, 1  ;;  %v1829_v50 = vrot.slane %v1828_v28, 2  ;;  %v1848_v34 = vrot.slane %v1847_v63, 4 }
 0x184   :  { %v1823_v38 = vmax.f32 %v1821_v48, %v1822_v33  ;;  %v1835_v29 = vmax.f32 %v1833_v61, %v1834_v24  ;;  %v1842_v30 = vmax.f32 %v1840_v62, %v1841_v60  ;;  %v1329_v25 = vpop.xlane.xlu0 %1328  ;;  %2085 = vmatpush.msra.mxu0 %v2065_v3  ;;  %v2015_v18 = vand.u32 127, %v2014_v21 }
 0x185   :  { %v1818_v5 = vmax.f32 %v1816_v37, %v1817_v9  ;;  %v1830_v56 = vmax.f32 %v1828_v28, %v1829_v50  ;;  %v1849_v6 = vmax.f32 %v1847_v63, %v1848_v34  ;;  %v1967_v45 = vsel %vm1255_vm1, %v1811_v4, %v1804_v23  ;;  %v1339_v47 = vpop.xlane.xlu2 %1338 }
 0x186   :  { %v1824_v31 = vrot.slane %v1823_v38, 1  ;;  %v1836_v32 = vrot.slane %v1835_v29, 2  ;;  %v1843_v14 = vrot.slane %v1842_v30, 2  ;;  %2086 = vmatpush.msra.mxu0 %v2064_v52  ;;  %v2002_v43 = vmul.f32 0.00390625, %v1335_v19 }
 0x187   :  { %v1831_v44 = vrot.slane %v1830_v56, 1  ;;  %v1850_v11 = vrot.slane %v1849_v6, 2  ;;  %v1968_v39 = vsel %vm1257_vm2, %v1818_v5, %v1967_v45  ;;  %v1337_v36 = vpop.xlane.xlu1 %1336  ;;  %v2017_v27 = vadd.s32 4294967288, %v2015_v18 }
 0x188   :  { %v1825_v40 = vmax.f32 %v1823_v38, %v1824_v31  ;;  %v1837_v8 = vmax.f32 %v1835_v29, %v1836_v32  ;;  %v1844_v59 = vmax.f32 %v1842_v30, %v1843_v14  ;;  %2087 = vmatpush.msra.mxu0 %v2063_v26  ;;  %v2003_v48 = vmul.f32 0.00390625, %v1337_v36 }
 0x189   :  { %v1832_v41 = vmax.f32 %v1830_v56, %v1831_v44  ;;  %v1851_v46 = vmax.f32 %v1849_v6, %v1850_v11  ;;  %v1999_v61 = vmul.f32 0.00390625, %v1329_v25  ;;  %v1998_v62 = vmul.f32 0.00390625, %v1327_v42  ;;  %v2067_v42 = vld [vmem:[%s2944_s2] sm:$0xff]  ;;  %s2293_s2 = smov [#allocation7]  }
 0x18a   :  { %v1838_v7 = vrot.slane %v1837_v8, 1  ;;  %v1845_v49 = vrot.slane %v1844_v59, 1  ;;  %v1969_v58 = vsel %vm1259_vm3, %v1825_v40, %v1968_v39  ;;  %v2029_v55 = vperm.slane %v2002_v43, %v2015_v18  ;;  %2112 = vmatpush.msra.mxu1 %v2067_v42  ;;  %s2147_s27 = sshll.u32 %s2293_s2, 4  ;;  %s2148_s27 = int_to_ptr.vmem [resolvable:$true] %s2147_s27 }
 0x18b   :  { %v1852_v53 = vrot.slane %v1851_v46, 1  ;;  %v1970_v10 = vsel %vm1261_vm4, %v1832_v41, %v1969_v58  ;;  %v2021_v37 = vadd.s32 4294967280, %v2015_v18  ;;  %v2000_v28 = vmul.f32 0.00390625, %v1331_v20 }
 0x18c   :  { %v1839_v16 = vmax.f32 %v1837_v8, %v1838_v7  ;;  %v1846_v54 = vmax.f32 %v1844_v59, %v1845_v49  ;;  %v1333_v22 = vpop.xlane.xlu0 %1332  ;;  %v2030_v33 = vperm.slane %v2003_v48, %v2017_v27  ;;  %v2004_v24 = vmul.f32 0.00390625, %v1339_v47 }
 0x18d   :  { %v1853_v57 = vmax.f32 %v1851_v46, %v1852_v53  ;;  %v1983_v0 = vpop.xlane.xlu2 %1982  ;;  %v2018_v60 = vperm.slane %v1999_v61, %v2017_v27  ;;  %v2025_v63 = vadd.s32 4294967272, %v2015_v18  ;;  %v2001_v9 = vmul.f32 0.00390625, %v1333_v22 }
 0x18e   :  { %v1971_v12 = vsel %vm1263_vm5, %v1839_v16, %v1970_v10  ;;  %v2016_v50 = vperm.slane %v1998_v62, %v2015_v18  ;;  %v2046_v34 = vperm.slane %v1983_v0, %v2015_v18  ;;  %v2022_v56 = vperm.slane %v2000_v28, %v2021_v37 }
 0x18f   :  { %v1972_v15 = vsel %vm1265_vm6, %v1846_v54, %v1971_v12  ;;  %v1341_v2 = vpop.xlane.xlu1 %1340  ;;  %v2032_v6 = vperm.slane %v2004_v24, %v2021_v37  ;;  %v2031_v32 = vsel %vm2019_vm8, %v2030_v33, %v2029_v55  ;;  %v2026_v11 = vperm.slane %v2001_v9, %v2025_v63 }
 0x190   :  { %v1973_v17 = vsel %vm1267_vm7, %v1853_v57, %v1972_v15  ;;  %v2005_v4 = vmul.f32 0.00390625, %v1341_v2  ;;  %v2020_v14 = vsel %vm2019_vm8, %v2018_v60, %v2016_v50 }
 0x191   :  { %1996 = vmax.xlane.f32.xlu0 %v1973_v17  ;;  %v2033_v41 = vsel %vm2023_vm9, %v2032_v6, %v2031_v32  ;;  %v2024_v49 = vsel %vm2023_vm9, %v2022_v56, %v2020_v14 }
 0x192   :  { %v2034_v44 = vperm.slane %v2005_v4, %v2025_v63  ;;  %v2028_v53 = vsel %vm2027_vm10, %v2026_v11, %v2024_v49 }
 0x194   :  { %v2035_v10 = vsel %vm2027_vm10, %v2034_v44, %v2033_v41 }
 0x195   :  { %v2036_v12 = vsel %vm1255_vm1, %v2035_v10, %v2028_v53 }
 0x197   :  { %v1991_v35 = vpop.xlane.xlu1 %1990 }
 0x198   :  { %v2053_v38 = vperm.slane %v1991_v35, %v2015_v18 }
 0x1a6   :  { %v1985_v51 = vpop.xlane.xlu0 %1984 }
 0x1a7   :  { %v2047_v29 = vperm.slane %v1985_v51, %v2017_v27 }
 0x1a9   :  { %v2048_v40 = vsel %vm2019_vm8, %v2047_v29, %v2046_v34 }
 0x1b7   :  { %v1993_v1 = vpop.xlane.xlu2 %1992 }
 0x1b8   :  { %v2054_v30 = vperm.slane %v1993_v1, %v2017_v27 }
 0x1ba   :  { %v2055_v8 = vsel %vm2019_vm8, %v2054_v30, %v2053_v38 }
 0x1d0   :  { %v1995_v5 = vpop.xlane.xlu1 %1994 }
 0x1d1   :  { %v2056_v39 = vperm.slane %v1995_v5, %v2021_v37 }
 0x1d3   :  { %v2057_v16 = vsel %vm2023_vm9, %v2056_v39, %v2055_v8 }
 0x1df   :  { %v1987_v23 = vpop.xlane.xlu0 %1986 }
 0x1e0   :  { %v2049_v45 = vperm.slane %v1987_v23, %v2021_v37 }
 0x1e2   :  { %v2050_v46 = vsel %vm2023_vm9, %v2049_v45, %v2048_v40 }
 0x1f0   :  { %v1989_v31 = vpop.xlane.xlu2 %1988 }
 0x1f1   :  { %v2051_v59 = vperm.slane %v1989_v31, %v2025_v63 }
 0x1f3   :  { %v2052_v54 = vsel %vm2027_vm10, %v2051_v59, %v2050_v46 }
 0x204   :  { %v1997_v7 = vpop.xlane.xlu0 %1996 }
 0x205   :  { %v2058_v58 = vperm.slane %v1997_v7, %v2025_v63 }
 0x207   :  { %v2059_v57 = vsel %vm2027_vm10, %v2058_v58, %v2057_v16 }
 0x208   :  { %v2060_v15 = vsel %vm1259_vm3, %v2059_v57, %v2052_v54 }
 0x209   :  { %v2062_v17 = vsel %vm742_vm0, %v2036_v12, %v2060_v15  ;;  %vm2140_vm0 = vcmask 254976  }
 0x20a   :  { %2159 = vmatmul.msk.f32.vlgmr.msra.gmra.mxu0 %vm2068_vm11, %v2062_v17 }
 0x287   :  { %v2089_v13 = vpop.f32.mrf.mxu0 }
 0x288   :  { %v2092_v19 = vmax.f32 %v2089_v13, 0.0 }
 0x28a   :  { %2160 = vmatmul.msk.f32.vlgmr.msra.gmra.mxu1 %vm2093_vm12, %v2092_v19 }
 0x307   :  { %v2114_v20 = vpop.f32.mrf.mxu1 }
 0x308   :  { %v2118_v25 = vrot.slane %v2114_v20, 2 }
 0x30a   :  { %v2120_v36 = vadd.f32 %v2118_v25, %v2114_v20 }
 0x30c   :  { %v2161_v47 = vmul.f32 -1.442695, %v2120_v36 }
 0x30e   :  { %2168 = vpow2.f32 %v2161_v47 }
 0x314   :  { %v2169_v3 = vpop.eup %2168 }
 0x315   :  { %v2124_v22 = vadd.f32 1.0, %v2169_v3 }
 0x317   :  { %2170 = vrcp.f32 %v2124_v22  ;;  %v2136_v0 = vand.u32 2147483648, %v2124_v22  ;;  %v2134_v21 = vand.u32 2147483647, %v2124_v22  ;;  %vm2130_vm14 = vweird.f32 %v2124_v22 }
 0x319   :  { %v2137_v18 = vor.u32 1.1754944e-38, %v2136_v0  ;;  %vm2135_vm1 = vcmp.eq.f32.partialorder %v2134_v21, 8.507059e+37 }
 0x31d   :  { %v2171_v52 = vpop.eup %2170 }
 0x31e   :  { %v2126_v26 = vmul.f32 %v2171_v52, %v2124_v22  ;;  %vm2131_vm13 = vweird.f32 %v2171_v52 }
 0x31f   :  { %vm2132_vm15 = vmor %vm2130_vm14, %vm2131_vm13 }
 0x320   :  { %v2127_v2 = vsub.f32 1.0, %v2126_v26 }
 0x322   :  { %v2128_v51 = vmul.f32 %v2171_v52, %v2127_v2 }
 0x324   :  { %v2129_v35 = vadd.f32 %v2171_v52, %v2128_v51 }
 0x326   :  { %v2133_v1 = vsel %vm2132_vm15, %v2171_v52, %v2129_v35 }
 0x327   :  { %v2138_v43 = vsel %vm2135_vm1, %v2137_v18, %v2133_v1 }
 0x328   :  { %2141 = vst.msk [vmem:[#allocation7] sm:$0x3] %vm2140_vm0, %v2138_v43 }
 0x329   :  { %2152 = dma.vmem_to_hbm [thread:$0]  %s2148_s27, 32, %s2150_s30, [#allocation6]  }
 0x32a   :  { %2286 = dma.done.wait [#allocation6], 32  }
 0x32b   :  { %2287 = vsyncadd [#allocation6], 4294967264 }
 0x32c   :  { %2157 = vsyncpa [#allocation5], 1 }
 0x32d   :  { %2158 = vsyncpa [#allocation6], 1 }

</bundles_post_ra>
